<compile_context>
chip_gen: v7x
topology: tpu7x:2x2x1
jax: 0.10.0
libtpu: 0.0.40
codegen_flags: <defaults>
</compile_context>

<pallas_src>
import jax
import jax.numpy as jnp
from jax import lax
from jax.experimental import pallas as pl
from jax.experimental.pallas import tpu as pltpu

NEG_SLOPE = 0.2


# ---------------------------------------------------------------------------
# Pallas kernels
# ---------------------------------------------------------------------------
def _make_conv_kernel(K, P, leaky):
    """Grouped-conv tap-accumulation kernel (one (batch, group) tile per grid step).

    x_ref : (1, 1, P, Cin_g, Lq)   bf16  phase-decomposed input slab
    w_ref : (1, K, Cout_g, Cin_g)  bf16  this group's weights, tap-major
    b_ref : (1, Cout_g, 1)         f32   this group's bias
    o_ref : (1, 1, Cout_g, Lout)   bf16
    """

    def kernel(x_ref, w_ref, b_ref, o_ref):
        cout_g, lout = o_ref.shape[-2], o_ref.shape[-1]
        acc = jnp.zeros((cout_g, lout), jnp.float32)
        for k in range(K):                      # static unroll, K <= 7
            r, q = k % P, k // P
            acc = acc + jnp.dot(
                w_ref[0, k],                    # (Cout_g, Cin_g)
                x_ref[0, 0, r, :, q:q + lout],  # (Cin_g, Lout) -- contiguous slice
                preferred_element_type=jnp.float32,
            )
        acc = acc + b_ref[0]
        if leaky:
            acc = jnp.where(acc >= 0, acc, NEG_SLOPE * acc)
        o_ref[0, 0] = acc.astype(o_ref.dtype)

    return kernel


def conv1d_pallas(x, w, b, *, stride, padding, leaky, out_dtype=jnp.bfloat16):
    """Grouped Conv1d + bias + optional LeakyReLU(0.2).

    x : (B, Cin, L)   w : (Cout, Cin_g, K) (PyTorch grouped layout)   b : (Cout,)
    groups is inferred as Cin // Cin_g; groups == 1 gives a dense conv.
    """
    B, Cin, L = x.shape
    Cout, Cin_g, K = w.shape
    G = Cin // Cin_g
    assert G * Cin_g == Cin and Cout % G == 0
    Cout_g = Cout // G
    P = stride

    Lp = L + 2 * padding                      # logical padded length
    Lout = (Lp - K) // P + 1
    assert Lout >= 1
    Lq = -(-Lp // P)                          # ceil(Lp / P): per-phase length
    pad_right = padding + (Lq * P - Lp)       # round length up to a multiple of P

    # Phase decomposition (glue; one cheap relayout, no K-fold im2col amplification):
    #   x_ph[b, g, r, c, s] = x_pad[b, g*Cin_g + c, s*P + r]
    x_pad = jnp.pad(x.astype(jnp.bfloat16), ((0, 0), (0, 0), (padding, pad_right)))
    x_ph = x_pad.reshape(B, G, Cin_g, Lq, P).transpose(0, 1, 4, 2, 3)

    # Weights tap-major per group: (G, K, Cout_g, Cin_g).  Keeping the group axis means
    # each grid step only DMAs its own block of the block-diagonal weight.
    w_ph = w.reshape(G, Cout_g, Cin_g, K).transpose(0, 3, 1, 2).astype(jnp.bfloat16)
    b_ph = b.reshape(G, Cout_g, 1).astype(jnp.float32)

    out = pl.pallas_call(
        _make_conv_kernel(K, P, leaky),
        out_shape=jax.ShapeDtypeStruct((B, G, Cout_g, Lout), out_dtype),
        grid=(B, G),
        in_specs=[
            pl.BlockSpec((1, 1, P, Cin_g, Lq), lambda i, g: (i, g, 0, 0, 0)),
            pl.BlockSpec((1, K, Cout_g, Cin_g), lambda i, g: (g, 0, 0, 0)),
            pl.BlockSpec((1, Cout_g, 1), lambda i, g: (g, 0, 0)),
        ],
        out_specs=pl.BlockSpec((1, 1, Cout_g, Lout), lambda i, g: (i, g, 0, 0)),
        compiler_params=pltpu.CompilerParams(
            dimension_semantics=("parallel", "parallel")),
    )(x_ph, w_ph, b_ph)
    # TODO(synk): for very long sequences add a halo'd length-tile grid axis
    # (element-offset blocks or manual DMA) so per-batch slabs stay within v7x's
    # 64 MiB VMEM; at these shapes the full-length slab is tiny.
    return out.reshape(B, Cout, Lout)


def _fused_1x1_kernel(x_ref, w5_ref, b5_ref, w6_ref, b6_ref, o5_ref, o6_ref):
    """Fused layers '5' and '6': two 1x1 convs + LeakyReLU, chained in VMEM."""
    y5 = jnp.dot(w5_ref[...], x_ref[0], preferred_element_type=jnp.float32)
    y5 = y5 + b5_ref[...]
    y5 = jnp.where(y5 >= 0, y5, NEG_SLOPE * y5)
    o5_ref[0] = y5.astype(o5_ref.dtype)
    y6 = jnp.dot(w6_ref[...], y5.astype(w6_ref.dtype),
                 preferred_element_type=jnp.float32)
    y6 = y6 + b6_ref[...]
    y6 = jnp.where(y6 >= 0, y6, NEG_SLOPE * y6)
    o6_ref[0] = y6.astype(o6_ref.dtype)


def fused_1x1_pallas(x, w5, b5, w6, b6, *, padding5=2, out_dtype=jnp.bfloat16):
    """Layers '5' (1x1 conv, padding=2, LeakyReLU) and '6' (1x1 conv, LeakyReLU) fused."""
    B, C, L = x.shape
    C5 = w5.shape[0]
    C6 = w6.shape[0]
    L5 = L + 2 * padding5     # kernel_size=1 with padding=2 -> bias-only border columns
    x_pad = jnp.pad(x.astype(jnp.bfloat16), ((0, 0), (0, 0), (padding5, padding5)))
    w5m = w5.reshape(C5, C).astype(jnp.bfloat16)
    w6m = w6.reshape(C6, C5).astype(jnp.bfloat16)
    b5m = b5.reshape(C5, 1).astype(jnp.float32)
    b6m = b6.reshape(C6, 1).astype(jnp.float32)
    return pl.pallas_call(
        _fused_1x1_kernel,
        out_shape=(jax.ShapeDtypeStruct((B, C5, L5), out_dtype),
                   jax.ShapeDtypeStruct((B, C6, L5), out_dtype)),
        grid=(B,),
        in_specs=[
            pl.BlockSpec((1, C, L5), lambda i: (i, 0, 0)),
            pl.BlockSpec((C5, C), lambda i: (0, 0)),
            pl.BlockSpec((C5, 1), lambda i: (0, 0)),
            pl.BlockSpec((C6, C5), lambda i: (0, 0)),
            pl.BlockSpec((C6, 1), lambda i: (0, 0)),
        ],
        out_specs=[pl.BlockSpec((1, C5, L5), lambda i: (i, 0, 0)),
                   pl.BlockSpec((1, C6, L5), lambda i: (i, 0, 0))],
        compiler_params=pltpu.CompilerParams(dimension_semantics=("parallel",)),
    )(x_pad, w5m, b5m, w6m, b6m)


# ---------------------------------------------------------------------------
# Parameter construction (deterministic; weight_norm reparam applied in glue)
# ---------------------------------------------------------------------------
def _weight_norm_conv_init(key, cout, cin_g, k):
    kv, kb = jax.random.split(key)
    v = jax.random.normal(kv, (cout, cin_g, k), jnp.float32) * 0.1
    norm = jnp.sqrt(jnp.sum(v * v, axis=(1, 2), keepdims=True)) + 1e-12
    g = norm                  # PyTorch weight_norm default init: g = ||v||
    w = g * v / norm          # == v
    b = jax.random.normal(kb, (cout,), jnp.float32) * 0.1
    return w, b


def init_disc_layer(key, n_features):
    keys = jax.random.split(key, 7)
    params = []
    # '0': Conv1d(128, F, 7) + LeakyReLU(0.2)
    params.append(_weight_norm_conv_init(keys[0], n_features, 128, 7))
    # '1'..'4': grouped strided convs (stride=4, K=5, padding=4, groups=from_f//4)
    to_f = n_features
    for i in range(4):
        from_f = to_f
        to_f = to_f * 2
        groups = from_f // 4
        params.append(_weight_norm_conv_init(keys[i + 1], to_f, from_f // groups, 5))
    # '5': Conv1d(16F, 16F, 1, padding=2) + LeakyReLU(0.2)
    params.append(_weight_norm_conv_init(keys[5], to_f, to_f, 1))
    # '6': Conv1d(16F, 128, 1) + LeakyReLU(0.2)
    params.append(_weight_norm_conv_init(keys[6], 128, to_f, 1))
    return params


# ---------------------------------------------------------------------------
# Forward pass
# ---------------------------------------------------------------------------
def disc_layer_forward(params, x):
    """DiscLayer.forward: returns the list of all 7 layer outputs (bf16)."""
    results = []
    w0, b0 = params[0]
    y = conv1d_pallas(x, w0, b0, stride=1, padding=0, leaky=True)
    results.append(y)
    for i in range(1, 5):
        wi, bi = params[i]
        y = conv1d_pallas(y, wi, bi, stride=4, padding=4, leaky=False)
        results.append(y)
    (w5, b5), (w6, b6) = params[5], params[6]
    y5, y6 = fused_1x1_pallas(y, w5, b5, w6, b6, padding5=2)
    results.append(y5)
    results.append(y6)
    return results


# ---------------------------------------------------------------------------
# Plain-JAX f32 reference (sanity check of the Pallas path)
# ---------------------------------------------------------------------------
def _conv1d_ref(x, w, b, stride, padding, groups, leaky):
    out = lax.conv_general_dilated(
        x, w, (stride,), [(padding, padding)],
        dimension_numbers=("NCH", "OIH", "NCH"),
        feature_group_count=groups,
        precision=lax.Precision.HIGHEST)
    out = out + b[None, :, None]
    if leaky:
        out = jnp.where(out >= 0, out, NEG_SLOPE * out)
    return out


def disc_layer_ref(params, x):
    cfgs = [(1, 0, True)] + [(4, 4, False)] * 4 + [(1, 2, True), (1, 0, True)]
    results = []
    y = x
    for (w, b), (s, p, lk) in zip(params, cfgs):
        g = y.shape[1] // w.shape[1]
        y = _conv1d_ref(y, w, b, s, p, g, lk)
        results.append(y)
    return results


# ---------------------------------------------------------------------------
if __name__ == "__main__":
    key = jax.random.PRNGKey(0)
    n_features = 4               # must be divisible by 4 (group sizes)
    B, C_in, L = 2, 128, 64      # DiscLayer input: (B, 128, L)

    k_x, k_p = jax.random.split(key)
    x = jax.random.normal(k_x, (B, C_in, L), jnp.float32)
    params = init_disc_layer(k_p, n_features)

    fwd = jax.jit(disc_layer_forward)
    out = fwd(params, x)
    out = jax.tree_util.tree_map(jax.block_until_ready, out)

    # Sanity check vs. f32 reference (kernels use bf16 operands / f32 accumulation).
    ref = disc_layer_ref(params, x)
    assert len(out) == 7 == len(ref)
    for o, r in zip(out, ref):
        assert o.shape == r.shape, (o.shape, r.shape)
        err = float(jnp.max(jnp.abs(o.astype(jnp.float32) - r)))
        scale = float(jnp.max(jnp.abs(r))) + 1.0
        assert err <= 5e-2 * scale, (err, scale, o.shape)

    print("KERNEL_OK")
</pallas_src>

<mosaic_0001>
module attributes {stable_mosaic.version = 11 : i64} {
  func.func @kernel(%arg0: i32, %arg1: i32, %arg2: memref<1x1x1x128x64xbf16, #tpu.memory_space<vmem>>, %arg3: memref<1x7x4x128xbf16, #tpu.memory_space<vmem>>, %arg4: memref<1x4x1xf32, #tpu.memory_space<vmem>>, %arg5: memref<1x1x4x58xbf16, #tpu.memory_space<vmem>>) attributes {dimension_semantics = [#tpu.dimension_semantics<parallel>, #tpu.dimension_semantics<parallel>], iteration_bounds = array<i64: 2, 1>, scalar_prefetch = 0 : i64, scratch_operands = 0 : i64, tpu.core_type = #tpu.core_type<tc>, window_params = [{transform_indices = @transform_0, window_bounds = array<i64: 1, 1, 1, 128, 64>}, {transform_indices = @transform_1, window_bounds = array<i64: 1, 7, 4, 128>}, {transform_indices = @transform_2, window_bounds = array<i64: 1, 4, 1>}, {transform_indices = @transform_3, window_bounds = array<i64: 1, 1, 4, 58>}]} {
    %cst = arith.constant 0.000000e+00 : f32
    %0 = vector.broadcast %cst : f32 to vector<4x58xf32>
    %c0 = arith.constant 0 : index
    %c0_0 = arith.constant 0 : index
    %c0_1 = arith.constant 0 : index
    %c0_2 = arith.constant 0 : index
    %1 = vector.load %arg3[%c0, %c0_0, %c0_1, %c0_2] : memref<1x7x4x128xbf16, #tpu.memory_space<vmem>>, vector<1x1x4x128xbf16>
    %2 = vector.shape_cast %1 : vector<1x1x4x128xbf16> to vector<4x128xbf16>
    %c0_3 = arith.constant 0 : index
    %c0_4 = arith.constant 0 : index
    %c0_5 = arith.constant 0 : index
    %c0_6 = arith.constant 0 : index
    %c0_7 = arith.constant 0 : index
    %3 = vector.load %arg2[%c0_3, %c0_4, %c0_5, %c0_6, %c0_7] : memref<1x1x1x128x64xbf16, #tpu.memory_space<vmem>>, vector<1x1x1x128x58xbf16>
    %4 = vector.shape_cast %3 : vector<1x1x1x128x58xbf16> to vector<128x58xbf16>
    %cst_8 = arith.constant dense<0.000000e+00> : vector<4x58xf32>
    %5 = tpu.matmul %2, %4, %cst_8 {dimension_numbers = #tpu.dot_dimension_numbers<[1], [0], [0], [1], [0, 0, 1, 1], [], []>} : vector<4x128xbf16>, vector<128x58xbf16>, vector<4x58xf32> -> vector<4x58xf32>
    %6 = arith.addf %0, %5 : vector<4x58xf32>
    %c0_9 = arith.constant 0 : index
    %c1 = arith.constant 1 : index
    %c0_10 = arith.constant 0 : index
    %c0_11 = arith.constant 0 : index
    %7 = vector.load %arg3[%c0_9, %c1, %c0_10, %c0_11] : memref<1x7x4x128xbf16, #tpu.memory_space<vmem>>, vector<1x1x4x128xbf16>
    %8 = vector.shape_cast %7 : vector<1x1x4x128xbf16> to vector<4x128xbf16>
    %c0_12 = arith.constant 0 : index
    %c0_13 = arith.constant 0 : index
    %c0_14 = arith.constant 0 : index
    %c0_15 = arith.constant 0 : index
    %c1_16 = arith.constant 1 : index
    %9 = vector.load %arg2[%c0_12, %c0_13, %c0_14, %c0_15, %c1_16] : memref<1x1x1x128x64xbf16, #tpu.memory_space<vmem>>, vector<1x1x1x128x58xbf16>
    %10 = vector.shape_cast %9 : vector<1x1x1x128x58xbf16> to vector<128x58xbf16>
    %cst_17 = arith.constant dense<0.000000e+00> : vector<4x58xf32>
    %11 = tpu.matmul %8, %10, %cst_17 {dimension_numbers = #tpu.dot_dimension_numbers<[1], [0], [0], [1], [0, 0, 1, 1], [], []>} : vector<4x128xbf16>, vector<128x58xbf16>, vector<4x58xf32> -> vector<4x58xf32>
    %12 = arith.addf %6, %11 : vector<4x58xf32>
    %c0_18 = arith.constant 0 : index
    %c2 = arith.constant 2 : index
    %c0_19 = arith.constant 0 : index
    %c0_20 = arith.constant 0 : index
    %13 = vector.load %arg3[%c0_18, %c2, %c0_19, %c0_20] : memref<1x7x4x128xbf16, #tpu.memory_space<vmem>>, vector<1x1x4x128xbf16>
    %14 = vector.shape_cast %13 : vector<1x1x4x128xbf16> to vector<4x128xbf16>
    %c0_21 = arith.constant 0 : index
    %c0_22 = arith.constant 0 : index
    %c0_23 = arith.constant 0 : index
    %c0_24 = arith.constant 0 : index
    %c2_25 = arith.constant 2 : index
    %15 = vector.load %arg2[%c0_21, %c0_22, %c0_23, %c0_24, %c2_25] : memref<1x1x1x128x64xbf16, #tpu.memory_space<vmem>>, vector<1x1x1x128x58xbf16>
    %16 = vector.shape_cast %15 : vector<1x1x1x128x58xbf16> to vector<128x58xbf16>
    %cst_26 = arith.constant dense<0.000000e+00> : vector<4x58xf32>
    %17 = tpu.matmul %14, %16, %cst_26 {dimension_numbers = #tpu.dot_dimension_numbers<[1], [0], [0], [1], [0, 0, 1, 1], [], []>} : vector<4x128xbf16>, vector<128x58xbf16>, vector<4x58xf32> -> vector<4x58xf32>
    %18 = arith.addf %12, %17 : vector<4x58xf32>
    %c0_27 = arith.constant 0 : index
    %c3 = arith.constant 3 : index
    %c0_28 = arith.constant 0 : index
    %c0_29 = arith.constant 0 : index
    %19 = vector.load %arg3[%c0_27, %c3, %c0_28, %c0_29] : memref<1x7x4x128xbf16, #tpu.memory_space<vmem>>, vector<1x1x4x128xbf16>
    %20 = vector.shape_cast %19 : vector<1x1x4x128xbf16> to vector<4x128xbf16>
    %c0_30 = arith.constant 0 : index
    %c0_31 = arith.constant 0 : index
    %c0_32 = arith.constant 0 : index
    %c0_33 = arith.constant 0 : index
    %c3_34 = arith.constant 3 : index
    %21 = vector.load %arg2[%c0_30, %c0_31, %c0_32, %c0_33, %c3_34] : memref<1x1x1x128x64xbf16, #tpu.memory_space<vmem>>, vector<1x1x1x128x58xbf16>
    %22 = vector.shape_cast %21 : vector<1x1x1x128x58xbf16> to vector<128x58xbf16>
    %cst_35 = arith.constant dense<0.000000e+00> : vector<4x58xf32>
    %23 = tpu.matmul %20, %22, %cst_35 {dimension_numbers = #tpu.dot_dimension_numbers<[1], [0], [0], [1], [0, 0, 1, 1], [], []>} : vector<4x128xbf16>, vector<128x58xbf16>, vector<4x58xf32> -> vector<4x58xf32>
    %24 = arith.addf %18, %23 : vector<4x58xf32>
    %c0_36 = arith.constant 0 : index
    %c4 = arith.constant 4 : index
    %c0_37 = arith.constant 0 : index
    %c0_38 = arith.constant 0 : index
    %25 = vector.load %arg3[%c0_36, %c4, %c0_37, %c0_38] : memref<1x7x4x128xbf16, #tpu.memory_space<vmem>>, vector<1x1x4x128xbf16>
    %26 = vector.shape_cast %25 : vector<1x1x4x128xbf16> to vector<4x128xbf16>
    %c0_39 = arith.constant 0 : index
    %c0_40 = arith.constant 0 : index
    %c0_41 = arith.constant 0 : index
    %c0_42 = arith.constant 0 : index
    %c4_43 = arith.constant 4 : index
    %27 = vector.load %arg2[%c0_39, %c0_40, %c0_41, %c0_42, %c4_43] : memref<1x1x1x128x64xbf16, #tpu.memory_space<vmem>>, vector<1x1x1x128x58xbf16>
    %28 = vector.shape_cast %27 : vector<1x1x1x128x58xbf16> to vector<128x58xbf16>
    %cst_44 = arith.constant dense<0.000000e+00> : vector<4x58xf32>
    %29 = tpu.matmul %26, %28, %cst_44 {dimension_numbers = #tpu.dot_dimension_numbers<[1], [0], [0], [1], [0, 0, 1, 1], [], []>} : vector<4x128xbf16>, vector<128x58xbf16>, vector<4x58xf32> -> vector<4x58xf32>
    %30 = arith.addf %24, %29 : vector<4x58xf32>
    %c0_45 = arith.constant 0 : index
    %c5 = arith.constant 5 : index
    %c0_46 = arith.constant 0 : index
    %c0_47 = arith.constant 0 : index
    %31 = vector.load %arg3[%c0_45, %c5, %c0_46, %c0_47] : memref<1x7x4x128xbf16, #tpu.memory_space<vmem>>, vector<1x1x4x128xbf16>
    %32 = vector.shape_cast %31 : vector<1x1x4x128xbf16> to vector<4x128xbf16>
    %c0_48 = arith.constant 0 : index
    %c0_49 = arith.constant 0 : index
    %c0_50 = arith.constant 0 : index
    %c0_51 = arith.constant 0 : index
    %c5_52 = arith.constant 5 : index
    %33 = vector.load %arg2[%c0_48, %c0_49, %c0_50, %c0_51, %c5_52] : memref<1x1x1x128x64xbf16, #tpu.memory_space<vmem>>, vector<1x1x1x128x58xbf16>
    %34 = vector.shape_cast %33 : vector<1x1x1x128x58xbf16> to vector<128x58xbf16>
    %cst_53 = arith.constant dense<0.000000e+00> : vector<4x58xf32>
    %35 = tpu.matmul %32, %34, %cst_53 {dimension_numbers = #tpu.dot_dimension_numbers<[1], [0], [0], [1], [0, 0, 1, 1], [], []>} : vector<4x128xbf16>, vector<128x58xbf16>, vector<4x58xf32> -> vector<4x58xf32>
    %36 = arith.addf %30, %35 : vector<4x58xf32>
    %c0_54 = arith.constant 0 : index
    %c6 = arith.constant 6 : index
    %c0_55 = arith.constant 0 : index
    %c0_56 = arith.constant 0 : index
    %37 = vector.load %arg3[%c0_54, %c6, %c0_55, %c0_56] : memref<1x7x4x128xbf16, #tpu.memory_space<vmem>>, vector<1x1x4x128xbf16>
    %38 = vector.shape_cast %37 : vector<1x1x4x128xbf16> to vector<4x128xbf16>
    %c0_57 = arith.constant 0 : index
    %c0_58 = arith.constant 0 : index
    %c0_59 = arith.constant 0 : index
    %c0_60 = arith.constant 0 : index
    %c6_61 = arith.constant 6 : index
    %39 = vector.load %arg2[%c0_57, %c0_58, %c0_59, %c0_60, %c6_61] : memref<1x1x1x128x64xbf16, #tpu.memory_space<vmem>>, vector<1x1x1x128x58xbf16>
    %40 = vector.shape_cast %39 : vector<1x1x1x128x58xbf16> to vector<128x58xbf16>
    %cst_62 = arith.constant dense<0.000000e+00> : vector<4x58xf32>
    %41 = tpu.matmul %38, %40, %cst_62 {dimension_numbers = #tpu.dot_dimension_numbers<[1], [0], [0], [1], [0, 0, 1, 1], [], []>} : vector<4x128xbf16>, vector<128x58xbf16>, vector<4x58xf32> -> vector<4x58xf32>
    %42 = arith.addf %36, %41 : vector<4x58xf32>
    %c0_63 = arith.constant 0 : index
    %c0_64 = arith.constant 0 : index
    %c0_65 = arith.constant 0 : index
    %43 = vector.load %arg4[%c0_63, %c0_64, %c0_65] : memref<1x4x1xf32, #tpu.memory_space<vmem>>, vector<1x4x1xf32>
    %44 = vector.shape_cast %43 : vector<1x4x1xf32> to vector<4x1xf32>
    %45 = vector.broadcast %44 : vector<4x1xf32> to vector<4x58xf32>
    %46 = arith.addf %42, %45 : vector<4x58xf32>
    %cst_66 = arith.constant 0.000000e+00 : f32
    %47 = vector.broadcast %cst_66 : f32 to vector<4x58xf32>
    %48 = arith.cmpf oge, %46, %47 : vector<4x58xf32>
    %cst_67 = arith.constant 2.000000e-01 : f32
    %49 = vector.broadcast %cst_67 : f32 to vector<4x58xf32>
    %50 = arith.mulf %49, %46 : vector<4x58xf32>
    %51 = arith.select %48, %46, %50 : vector<4x58xi1>, vector<4x58xf32>
    %52 = arith.truncf %51 : vector<4x58xf32> to vector<4x58xbf16>
    %c0_68 = arith.constant 0 : index
    %c0_69 = arith.constant 0 : index
    %c0_70 = arith.constant 0 : index
    %c0_71 = arith.constant 0 : index
    %53 = vector.load %arg5[%c0_68, %c0_69, %c0_70, %c0_71] : memref<1x1x4x58xbf16, #tpu.memory_space<vmem>>, vector<1x1x4x58xbf16>
    %54 = vector.shape_cast %53 : vector<1x1x4x58xbf16> to vector<4x58xbf16>
    %55 = vector.shape_cast %52 : vector<4x58xbf16> to vector<1x1x4x58xbf16>
    tpu.vector_store %arg5[%c0_68, %c0_69, %c0_70, %c0_71], %55 {strides = array<i32>} : memref<1x1x4x58xbf16, #tpu.memory_space<vmem>>, vector<1x1x4x58xbf16>,
    return
  }
  func.func @transform_0(%arg0: i32, %arg1: i32) -> (i32, i32, i32, i32, i32) {
    %c0_i32 = arith.constant 0 : i32
    %c0_i32_0 = arith.constant 0 : i32
    %c0_i32_1 = arith.constant 0 : i32
    %c0_i32_2 = arith.constant 0 : i32
    return %arg0, %arg1, %c0_i32, %c0_i32_0, %c0_i32_1 : i32, i32, i32, i32, i32
  }
  func.func @transform_1(%arg0: i32, %arg1: i32) -> (i32, i32, i32, i32) {
    %c0_i32 = arith.constant 0 : i32
    %c0_i32_0 = arith.constant 0 : i32
    %c0_i32_1 = arith.constant 0 : i32
    %c0_i32_2 = arith.constant 0 : i32
    return %arg1, %c0_i32, %c0_i32_0, %c0_i32_1 : i32, i32, i32, i32
  }
  func.func @transform_2(%arg0: i32, %arg1: i32) -> (i32, i32, i32) {
    %c0_i32 = arith.constant 0 : i32
    %c0_i32_0 = arith.constant 0 : i32
    %c0_i32_1 = arith.constant 0 : i32
    return %arg1, %c0_i32, %c0_i32_0 : i32, i32, i32
  }
  func.func @transform_3(%arg0: i32, %arg1: i32) -> (i32, i32, i32, i32) {
    %c0_i32 = arith.constant 0 : i32
    %c0_i32_0 = arith.constant 0 : i32
    %c0_i32_1 = arith.constant 0 : i32
    return %arg0, %arg1, %c0_i32, %c0_i32_0 : i32, i32, i32, i32
  }
}

module attributes {stable_mosaic.version = 11 : i64} {
  func.func @kernel(%arg0: i32, %arg1: i32, %arg2: memref<1x1x4x4x17xbf16, #tpu.memory_space<vmem>>, %arg3: memref<1x5x8x4xbf16, #tpu.memory_space<vmem>>, %arg4: memref<1x8x1xf32, #tpu.memory_space<vmem>>, %arg5: memref<1x1x8x16xbf16, #tpu.memory_space<vmem>>) attributes {dimension_semantics = [#tpu.dimension_semantics<parallel>, #tpu.dimension_semantics<parallel>], iteration_bounds = array<i64: 2, 1>, scalar_prefetch = 0 : i64, scratch_operands = 0 : i64, tpu.core_type = #tpu.core_type<tc>, window_params = [{transform_indices = @transform_0, window_bounds = array<i64: 1, 1, 4, 4, 17>}, {transform_indices = @transform_1, window_bounds = array<i64: 1, 5, 8, 4>}, {transform_indices = @transform_2, window_bounds = array<i64: 1, 8, 1>}, {transform_indices = @transform_3, window_bounds = array<i64: 1, 1, 8, 16>}]} {
    %cst = arith.constant 0.000000e+00 : f32
    %0 = vector.broadcast %cst : f32 to vector<8x16xf32>
    %c0 = arith.constant 0 : index
    %c0_0 = arith.constant 0 : index
    %c0_1 = arith.constant 0 : index
    %c0_2 = arith.constant 0 : index
    %1 = vector.load %arg3[%c0, %c0_0, %c0_1, %c0_2] : memref<1x5x8x4xbf16, #tpu.memory_space<vmem>>, vector<1x1x8x4xbf16>
    %2 = vector.shape_cast %1 : vector<1x1x8x4xbf16> to vector<8x4xbf16>
    %c0_3 = arith.constant 0 : index
    %c0_4 = arith.constant 0 : index
    %c0_5 = arith.constant 0 : index
    %c0_6 = arith.constant 0 : index
    %c0_7 = arith.constant 0 : index
    %3 = vector.load %arg2[%c0_3, %c0_4, %c0_5, %c0_6, %c0_7] : memref<1x1x4x4x17xbf16, #tpu.memory_space<vmem>>, vector<1x1x1x4x16xbf16>
    %4 = vector.shape_cast %3 : vector<1x1x1x4x16xbf16> to vector<4x16xbf16>
    %cst_8 = arith.constant dense<0.000000e+00> : vector<8x16xf32>
    %5 = tpu.matmul %2, %4, %cst_8 {dimension_numbers = #tpu.dot_dimension_numbers<[1], [0], [0], [1], [0, 0, 1, 1], [], []>} : vector<8x4xbf16>, vector<4x16xbf16>, vector<8x16xf32> -> vector<8x16xf32>
    %6 = arith.addf %0, %5 : vector<8x16xf32>
    %c0_9 = arith.constant 0 : index
    %c1 = arith.constant 1 : index
    %c0_10 = arith.constant 0 : index
    %c0_11 = arith.constant 0 : index
    %7 = vector.load %arg3[%c0_9, %c1, %c0_10, %c0_11] : memref<1x5x8x4xbf16, #tpu.memory_space<vmem>>, vector<1x1x8x4xbf16>
    %8 = vector.shape_cast %7 : vector<1x1x8x4xbf16> to vector<8x4xbf16>
    %c0_12 = arith.constant 0 : index
    %c0_13 = arith.constant 0 : index
    %c1_14 = arith.constant 1 : index
    %c0_15 = arith.constant 0 : index
    %c0_16 = arith.constant 0 : index
    %9 = vector.load %arg2[%c0_12, %c0_13, %c1_14, %c0_15, %c0_16] : memref<1x1x4x4x17xbf16, #tpu.memory_space<vmem>>, vector<1x1x1x4x16xbf16>
    %10 = vector.shape_cast %9 : vector<1x1x1x4x16xbf16> to vector<4x16xbf16>
    %cst_17 = arith.constant dense<0.000000e+00> : vector<8x16xf32>
    %11 = tpu.matmul %8, %10, %cst_17 {dimension_numbers = #tpu.dot_dimension_numbers<[1], [0], [0], [1], [0, 0, 1, 1], [], []>} : vector<8x4xbf16>, vector<4x16xbf16>, vector<8x16xf32> -> vector<8x16xf32>
    %12 = arith.addf %6, %11 : vector<8x16xf32>
    %c0_18 = arith.constant 0 : index
    %c2 = arith.constant 2 : index
    %c0_19 = arith.constant 0 : index
    %c0_20 = arith.constant 0 : index
    %13 = vector.load %arg3[%c0_18, %c2, %c0_19, %c0_20] : memref<1x5x8x4xbf16, #tpu.memory_space<vmem>>, vector<1x1x8x4xbf16>
    %14 = vector.shape_cast %13 : vector<1x1x8x4xbf16> to vector<8x4xbf16>
    %c0_21 = arith.constant 0 : index
    %c0_22 = arith.constant 0 : index
    %c2_23 = arith.constant 2 : index
    %c0_24 = arith.constant 0 : index
    %c0_25 = arith.constant 0 : index
    %15 = vector.load %arg2[%c0_21, %c0_22, %c2_23, %c0_24, %c0_25] : memref<1x1x4x4x17xbf16, #tpu.memory_space<vmem>>, vector<1x1x1x4x16xbf16>
    %16 = vector.shape_cast %15 : vector<1x1x1x4x16xbf16> to vector<4x16xbf16>
    %cst_26 = arith.constant dense<0.000000e+00> : vector<8x16xf32>
    %17 = tpu.matmul %14, %16, %cst_26 {dimension_numbers = #tpu.dot_dimension_numbers<[1], [0], [0], [1], [0, 0, 1, 1], [], []>} : vector<8x4xbf16>, vector<4x16xbf16>, vector<8x16xf32> -> vector<8x16xf32>
    %18 = arith.addf %12, %17 : vector<8x16xf32>
    %c0_27 = arith.constant 0 : index
    %c3 = arith.constant 3 : index
    %c0_28 = arith.constant 0 : index
    %c0_29 = arith.constant 0 : index
    %19 = vector.load %arg3[%c0_27, %c3, %c0_28, %c0_29] : memref<1x5x8x4xbf16, #tpu.memory_space<vmem>>, vector<1x1x8x4xbf16>
    %20 = vector.shape_cast %19 : vector<1x1x8x4xbf16> to vector<8x4xbf16>
    %c0_30 = arith.constant 0 : index
    %c0_31 = arith.constant 0 : index
    %c3_32 = arith.constant 3 : index
    %c0_33 = arith.constant 0 : index
    %c0_34 = arith.constant 0 : index
    %21 = vector.load %arg2[%c0_30, %c0_31, %c3_32, %c0_33, %c0_34] : memref<1x1x4x4x17xbf16, #tpu.memory_space<vmem>>, vector<1x1x1x4x16xbf16>
    %22 = vector.shape_cast %21 : vector<1x1x1x4x16xbf16> to vector<4x16xbf16>
    %cst_35 = arith.constant dense<0.000000e+00> : vector<8x16xf32>
    %23 = tpu.matmul %20, %22, %cst_35 {dimension_numbers = #tpu.dot_dimension_numbers<[1], [0], [0], [1], [0, 0, 1, 1], [], []>} : vector<8x4xbf16>, vector<4x16xbf16>, vector<8x16xf32> -> vector<8x16xf32>
    %24 = arith.addf %18, %23 : vector<8x16xf32>
    %c0_36 = arith.constant 0 : index
    %c4 = arith.constant 4 : index
    %c0_37 = arith.constant 0 : index
    %c0_38 = arith.constant 0 : index
    %25 = vector.load %arg3[%c0_36, %c4, %c0_37, %c0_38] : memref<1x5x8x4xbf16, #tpu.memory_space<vmem>>, vector<1x1x8x4xbf16>
    %26 = vector.shape_cast %25 : vector<1x1x8x4xbf16> to vector<8x4xbf16>
    %c0_39 = arith.constant 0 : index
    %c0_40 = arith.constant 0 : index
    %c0_41 = arith.constant 0 : index
    %c0_42 = arith.constant 0 : index
    %c1_43 = arith.constant 1 : index
    %27 = vector.load %arg2[%c0_39, %c0_40, %c0_41, %c0_42, %c1_43] : memref<1x1x4x4x17xbf16, #tpu.memory_space<vmem>>, vector<1x1x1x4x16xbf16>
    %28 = vector.shape_cast %27 : vector<1x1x1x4x16xbf16> to vector<4x16xbf16>
    %cst_44 = arith.constant dense<0.000000e+00> : vector<8x16xf32>
    %29 = tpu.matmul %26, %28, %cst_44 {dimension_numbers = #tpu.dot_dimension_numbers<[1], [0], [0], [1], [0, 0, 1, 1], [], []>} : vector<8x4xbf16>, vector<4x16xbf16>, vector<8x16xf32> -> vector<8x16xf32>
    %30 = arith.addf %24, %29 : vector<8x16xf32>
    %c0_45 = arith.constant 0 : index
    %c0_46 = arith.constant 0 : index
    %c0_47 = arith.constant 0 : index
    %31 = vector.load %arg4[%c0_45, %c0_46, %c0_47] : memref<1x8x1xf32, #tpu.memory_space<vmem>>, vector<1x8x1xf32>
    %32 = vector.shape_cast %31 : vector<1x8x1xf32> to vector<8x1xf32>
    %33 = vector.broadcast %32 : vector<8x1xf32> to vector<8x16xf32>
    %34 = arith.addf %30, %33 : vector<8x16xf32>
    %35 = arith.truncf %34 : vector<8x16xf32> to vector<8x16xbf16>
    %c0_48 = arith.constant 0 : index
    %c0_49 = arith.constant 0 : index
    %c0_50 = arith.constant 0 : index
    %c0_51 = arith.constant 0 : index
    %36 = vector.load %arg5[%c0_48, %c0_49, %c0_50, %c0_51] : memref<1x1x8x16xbf16, #tpu.memory_space<vmem>>, vector<1x1x8x16xbf16>
    %37 = vector.shape_cast %36 : vector<1x1x8x16xbf16> to vector<8x16xbf16>
    %38 = vector.shape_cast %35 : vector<8x16xbf16> to vector<1x1x8x16xbf16>
    tpu.vector_store %arg5[%c0_48, %c0_49, %c0_50, %c0_51], %38 {strides = array<i32>} : memref<1x1x8x16xbf16, #tpu.memory_space<vmem>>, vector<1x1x8x16xbf16>,
    return
  }
  func.func @transform_0(%arg0: i32, %arg1: i32) -> (i32, i32, i32, i32, i32) {
    %c0_i32 = arith.constant 0 : i32
    %c0_i32_0 = arith.constant 0 : i32
    %c0_i32_1 = arith.constant 0 : i32
    %c0_i32_2 = arith.constant 0 : i32
    return %arg0, %arg1, %c0_i32, %c0_i32_0, %c0_i32_1 : i32, i32, i32, i32, i32
  }
  func.func @transform_1(%arg0: i32, %arg1: i32) -> (i32, i32, i32, i32) {
    %c0_i32 = arith.constant 0 : i32
    %c0_i32_0 = arith.constant 0 : i32
    %c0_i32_1 = arith.constant 0 : i32
    %c0_i32_2 = arith.constant 0 : i32
    return %arg1, %c0_i32, %c0_i32_0, %c0_i32_1 : i32, i32, i32, i32
  }
  func.func @transform_2(%arg0: i32, %arg1: i32) -> (i32, i32, i32) {
    %c0_i32 = arith.constant 0 : i32
    %c0_i32_0 = arith.constant 0 : i32
    %c0_i32_1 = arith.constant 0 : i32
    return %arg1, %c0_i32, %c0_i32_0 : i32, i32, i32
  }
  func.func @transform_3(%arg0: i32, %arg1: i32) -> (i32, i32, i32, i32) {
    %c0_i32 = arith.constant 0 : i32
    %c0_i32_0 = arith.constant 0 : i32
    %c0_i32_1 = arith.constant 0 : i32
    return %arg0, %arg1, %c0_i32, %c0_i32_0 : i32, i32, i32, i32
  }
}

module attributes {stable_mosaic.version = 11 : i64} {
  func.func @kernel(%arg0: i32, %arg1: i32, %arg2: memref<1x1x4x4x6xbf16, #tpu.memory_space<vmem>>, %arg3: memref<1x5x8x4xbf16, #tpu.memory_space<vmem>>, %arg4: memref<1x8x1xf32, #tpu.memory_space<vmem>>, %arg5: memref<1x1x8x5xbf16, #tpu.memory_space<vmem>>) attributes {dimension_semantics = [#tpu.dimension_semantics<parallel>, #tpu.dimension_semantics<parallel>], iteration_bounds = array<i64: 2, 2>, scalar_prefetch = 0 : i64, scratch_operands = 0 : i64, tpu.core_type = #tpu.core_type<tc>, window_params = [{transform_indices = @transform_0, window_bounds = array<i64: 1, 1, 4, 4, 6>}, {transform_indices = @transform_1, window_bounds = array<i64: 1, 5, 8, 4>}, {transform_indices = @transform_2, window_bounds = array<i64: 1, 8, 1>}, {transform_indices = @transform_3, window_bounds = array<i64: 1, 1, 8, 5>}]} {
    %cst = arith.constant 0.000000e+00 : f32
    %0 = vector.broadcast %cst : f32 to vector<8x5xf32>
    %c0 = arith.constant 0 : index
    %c0_0 = arith.constant 0 : index
    %c0_1 = arith.constant 0 : index
    %c0_2 = arith.constant 0 : index
    %1 = vector.load %arg3[%c0, %c0_0, %c0_1, %c0_2] : memref<1x5x8x4xbf16, #tpu.memory_space<vmem>>, vector<1x1x8x4xbf16>
    %2 = vector.shape_cast %1 : vector<1x1x8x4xbf16> to vector<8x4xbf16>
    %c0_3 = arith.constant 0 : index
    %c0_4 = arith.constant 0 : index
    %c0_5 = arith.constant 0 : index
    %c0_6 = arith.constant 0 : index
    %c0_7 = arith.constant 0 : index
    %3 = vector.load %arg2[%c0_3, %c0_4, %c0_5, %c0_6, %c0_7] : memref<1x1x4x4x6xbf16, #tpu.memory_space<vmem>>, vector<1x1x1x4x5xbf16>
    %4 = vector.shape_cast %3 : vector<1x1x1x4x5xbf16> to vector<4x5xbf16>
    %cst_8 = arith.constant dense<0.000000e+00> : vector<8x5xf32>
    %5 = tpu.matmul %2, %4, %cst_8 {dimension_numbers = #tpu.dot_dimension_numbers<[1], [0], [0], [1], [0, 0, 1, 1], [], []>} : vector<8x4xbf16>, vector<4x5xbf16>, vector<8x5xf32> -> vector<8x5xf32>
    %6 = arith.addf %0, %5 : vector<8x5xf32>
    %c0_9 = arith.constant 0 : index
    %c1 = arith.constant 1 : index
    %c0_10 = arith.constant 0 : index
    %c0_11 = arith.constant 0 : index
    %7 = vector.load %arg3[%c0_9, %c1, %c0_10, %c0_11] : memref<1x5x8x4xbf16, #tpu.memory_space<vmem>>, vector<1x1x8x4xbf16>
    %8 = vector.shape_cast %7 : vector<1x1x8x4xbf16> to vector<8x4xbf16>
    %c0_12 = arith.constant 0 : index
    %c0_13 = arith.constant 0 : index
    %c1_14 = arith.constant 1 : index
    %c0_15 = arith.constant 0 : index
    %c0_16 = arith.constant 0 : index
    %9 = vector.load %arg2[%c0_12, %c0_13, %c1_14, %c0_15, %c0_16] : memref<1x1x4x4x6xbf16, #tpu.memory_space<vmem>>, vector<1x1x1x4x5xbf16>
    %10 = vector.shape_cast %9 : vector<1x1x1x4x5xbf16> to vector<4x5xbf16>
    %cst_17 = arith.constant dense<0.000000e+00> : vector<8x5xf32>
    %11 = tpu.matmul %8, %10, %cst_17 {dimension_numbers = #tpu.dot_dimension_numbers<[1], [0], [0], [1], [0, 0, 1, 1], [], []>} : vector<8x4xbf16>, vector<4x5xbf16>, vector<8x5xf32> -> vector<8x5xf32>
    %12 = arith.addf %6, %11 : vector<8x5xf32>
    %c0_18 = arith.constant 0 : index
    %c2 = arith.constant 2 : index
    %c0_19 = arith.constant 0 : index
    %c0_20 = arith.constant 0 : index
    %13 = vector.load %arg3[%c0_18, %c2, %c0_19, %c0_20] : memref<1x5x8x4xbf16, #tpu.memory_space<vmem>>, vector<1x1x8x4xbf16>
    %14 = vector.shape_cast %13 : vector<1x1x8x4xbf16> to vector<8x4xbf16>
    %c0_21 = arith.constant 0 : index
    %c0_22 = arith.constant 0 : index
    %c2_23 = arith.constant 2 : index
    %c0_24 = arith.constant 0 : index
    %c0_25 = arith.constant 0 : index
    %15 = vector.load %arg2[%c0_21, %c0_22, %c2_23, %c0_24, %c0_25] : memref<1x1x4x4x6xbf16, #tpu.memory_space<vmem>>, vector<1x1x1x4x5xbf16>
    %16 = vector.shape_cast %15 : vector<1x1x1x4x5xbf16> to vector<4x5xbf16>
    %cst_26 = arith.constant dense<0.000000e+00> : vector<8x5xf32>
    %17 = tpu.matmul %14, %16, %cst_26 {dimension_numbers = #tpu.dot_dimension_numbers<[1], [0], [0], [1], [0, 0, 1, 1], [], []>} : vector<8x4xbf16>, vector<4x5xbf16>, vector<8x5xf32> -> vector<8x5xf32>
    %18 = arith.addf %12, %17 : vector<8x5xf32>
    %c0_27 = arith.constant 0 : index
    %c3 = arith.constant 3 : index
    %c0_28 = arith.constant 0 : index
    %c0_29 = arith.constant 0 : index
    %19 = vector.load %arg3[%c0_27, %c3, %c0_28, %c0_29] : memref<1x5x8x4xbf16, #tpu.memory_space<vmem>>, vector<1x1x8x4xbf16>
    %20 = vector.shape_cast %19 : vector<1x1x8x4xbf16> to vector<8x4xbf16>
    %c0_30 = arith.constant 0 : index
    %c0_31 = arith.constant 0 : index
    %c3_32 = arith.constant 3 : index
    %c0_33 = arith.constant 0 : index
    %c0_34 = arith.constant 0 : index
    %21 = vector.load %arg2[%c0_30, %c0_31, %c3_32, %c0_33, %c0_34] : memref<1x1x4x4x6xbf16, #tpu.memory_space<vmem>>, vector<1x1x1x4x5xbf16>
    %22 = vector.shape_cast %21 : vector<1x1x1x4x5xbf16> to vector<4x5xbf16>
    %cst_35 = arith.constant dense<0.000000e+00> : vector<8x5xf32>
    %23 = tpu.matmul %20, %22, %cst_35 {dimension_numbers = #tpu.dot_dimension_numbers<[1], [0], [0], [1], [0, 0, 1, 1], [], []>} : vector<8x4xbf16>, vector<4x5xbf16>, vector<8x5xf32> -> vector<8x5xf32>
    %24 = arith.addf %18, %23 : vector<8x5xf32>
    %c0_36 = arith.constant 0 : index
    %c4 = arith.constant 4 : index
    %c0_37 = arith.constant 0 : index
    %c0_38 = arith.constant 0 : index
    %25 = vector.load %arg3[%c0_36, %c4, %c0_37, %c0_38] : memref<1x5x8x4xbf16, #tpu.memory_space<vmem>>, vector<1x1x8x4xbf16>
    %26 = vector.shape_cast %25 : vector<1x1x8x4xbf16> to vector<8x4xbf16>
    %c0_39 = arith.constant 0 : index
    %c0_40 = arith.constant 0 : index
    %c0_41 = arith.constant 0 : index
    %c0_42 = arith.constant 0 : index
    %c1_43 = arith.constant 1 : index
    %27 = vector.load %arg2[%c0_39, %c0_40, %c0_41, %c0_42, %c1_43] : memref<1x1x4x4x6xbf16, #tpu.memory_space<vmem>>, vector<1x1x1x4x5xbf16>
    %28 = vector.shape_cast %27 : vector<1x1x1x4x5xbf16> to vector<4x5xbf16>
    %cst_44 = arith.constant dense<0.000000e+00> : vector<8x5xf32>
    %29 = tpu.matmul %26, %28, %cst_44 {dimension_numbers = #tpu.dot_dimension_numbers<[1], [0], [0], [1], [0, 0, 1, 1], [], []>} : vector<8x4xbf16>, vector<4x5xbf16>, vector<8x5xf32> -> vector<8x5xf32>
    %30 = arith.addf %24, %29 : vector<8x5xf32>
    %c0_45 = arith.constant 0 : index
    %c0_46 = arith.constant 0 : index
    %c0_47 = arith.constant 0 : index
    %31 = vector.load %arg4[%c0_45, %c0_46, %c0_47] : memref<1x8x1xf32, #tpu.memory_space<vmem>>, vector<1x8x1xf32>
    %32 = vector.shape_cast %31 : vector<1x8x1xf32> to vector<8x1xf32>
    %33 = vector.broadcast %32 : vector<8x1xf32> to vector<8x5xf32>
    %34 = arith.addf %30, %33 : vector<8x5xf32>
    %35 = arith.truncf %34 : vector<8x5xf32> to vector<8x5xbf16>
    %c0_48 = arith.constant 0 : index
    %c0_49 = arith.constant 0 : index
    %c0_50 = arith.constant 0 : index
    %c0_51 = arith.constant 0 : index
    %36 = vector.load %arg5[%c0_48, %c0_49, %c0_50, %c0_51] : memref<1x1x8x5xbf16, #tpu.memory_space<vmem>>, vector<1x1x8x5xbf16>
    %37 = vector.shape_cast %36 : vector<1x1x8x5xbf16> to vector<8x5xbf16>
    %38 = vector.shape_cast %35 : vector<8x5xbf16> to vector<1x1x8x5xbf16>
    tpu.vector_store %arg5[%c0_48, %c0_49, %c0_50, %c0_51], %38 {strides = array<i32>} : memref<1x1x8x5xbf16, #tpu.memory_space<vmem>>, vector<1x1x8x5xbf16>,
    return
  }
  func.func @transform_0(%arg0: i32, %arg1: i32) -> (i32, i32, i32, i32, i32) {
    %c0_i32 = arith.constant 0 : i32
    %c0_i32_0 = arith.constant 0 : i32
    %c0_i32_1 = arith.constant 0 : i32
    %c0_i32_2 = arith.constant 0 : i32
    return %arg0, %arg1, %c0_i32, %c0_i32_0, %c0_i32_1 : i32, i32, i32, i32, i32
  }
  func.func @transform_1(%arg0: i32, %arg1: i32) -> (i32, i32, i32, i32) {
    %c0_i32 = arith.constant 0 : i32
    %c0_i32_0 = arith.constant 0 : i32
    %c0_i32_1 = arith.constant 0 : i32
    %c0_i32_2 = arith.constant 0 : i32
    return %arg1, %c0_i32, %c0_i32_0, %c0_i32_1 : i32, i32, i32, i32
  }
  func.func @transform_2(%arg0: i32, %arg1: i32) -> (i32, i32, i32) {
    %c0_i32 = arith.constant 0 : i32
    %c0_i32_0 = arith.constant 0 : i32
    %c0_i32_1 = arith.constant 0 : i32
    return %arg1, %c0_i32, %c0_i32_0 : i32, i32, i32
  }
  func.func @transform_3(%arg0: i32, %arg1: i32) -> (i32, i32, i32, i32) {
    %c0_i32 = arith.constant 0 : i32
    %c0_i32_0 = arith.constant 0 : i32
    %c0_i32_1 = arith.constant 0 : i32
    return %arg0, %arg1, %c0_i32, %c0_i32_0 : i32, i32, i32, i32
  }
}

module attributes {stable_mosaic.version = 11 : i64} {
  func.func @kernel(%arg0: i32, %arg1: i32, %arg2: memref<1x1x4x4x4xbf16, #tpu.memory_space<vmem>>, %arg3: memref<1x5x8x4xbf16, #tpu.memory_space<vmem>>, %arg4: memref<1x8x1xf32, #tpu.memory_space<vmem>>, %arg5: memref<1x1x8x3xbf16, #tpu.memory_space<vmem>>) attributes {dimension_semantics = [#tpu.dimension_semantics<parallel>, #tpu.dimension_semantics<parallel>], iteration_bounds = array<i64: 2, 4>, scalar_prefetch = 0 : i64, scratch_operands = 0 : i64, tpu.core_type = #tpu.core_type<tc>, window_params = [{transform_indices = @transform_0, window_bounds = array<i64: 1, 1, 4, 4, 4>}, {transform_indices = @transform_1, window_bounds = array<i64: 1, 5, 8, 4>}, {transform_indices = @transform_2, window_bounds = array<i64: 1, 8, 1>}, {transform_indices = @transform_3, window_bounds = array<i64: 1, 1, 8, 3>}]} {
    %cst = arith.constant 0.000000e+00 : f32
    %0 = vector.broadcast %cst : f32 to vector<8x3xf32>
    %c0 = arith.constant 0 : index
    %c0_0 = arith.constant 0 : index
    %c0_1 = arith.constant 0 : index
    %c0_2 = arith.constant 0 : index
    %1 = vector.load %arg3[%c0, %c0_0, %c0_1, %c0_2] : memref<1x5x8x4xbf16, #tpu.memory_space<vmem>>, vector<1x1x8x4xbf16>
    %2 = vector.shape_cast %1 : vector<1x1x8x4xbf16> to vector<8x4xbf16>
    %c0_3 = arith.constant 0 : index
    %c0_4 = arith.constant 0 : index
    %c0_5 = arith.constant 0 : index
    %c0_6 = arith.constant 0 : index
    %c0_7 = arith.constant 0 : index
    %3 = vector.load %arg2[%c0_3, %c0_4, %c0_5, %c0_6, %c0_7] : memref<1x1x4x4x4xbf16, #tpu.memory_space<vmem>>, vector<1x1x1x4x3xbf16>
    %4 = vector.shape_cast %3 : vector<1x1x1x4x3xbf16> to vector<4x3xbf16>
    %cst_8 = arith.constant dense<0.000000e+00> : vector<8x3xf32>
    %5 = tpu.matmul %2, %4, %cst_8 {dimension_numbers = #tpu.dot_dimension_numbers<[1], [0], [0], [1], [0, 0, 1, 1], [], []>} : vector<8x4xbf16>, vector<4x3xbf16>, vector<8x3xf32> -> vector<8x3xf32>
    %6 = arith.addf %0, %5 : vector<8x3xf32>
    %c0_9 = arith.constant 0 : index
    %c1 = arith.constant 1 : index
    %c0_10 = arith.constant 0 : index
    %c0_11 = arith.constant 0 : index
    %7 = vector.load %arg3[%c0_9, %c1, %c0_10, %c0_11] : memref<1x5x8x4xbf16, #tpu.memory_space<vmem>>, vector<1x1x8x4xbf16>
    %8 = vector.shape_cast %7 : vector<1x1x8x4xbf16> to vector<8x4xbf16>
    %c0_12 = arith.constant 0 : index
    %c0_13 = arith.constant 0 : index
    %c1_14 = arith.constant 1 : index
    %c0_15 = arith.constant 0 : index
    %c0_16 = arith.constant 0 : index
    %9 = vector.load %arg2[%c0_12, %c0_13, %c1_14, %c0_15, %c0_16] : memref<1x1x4x4x4xbf16, #tpu.memory_space<vmem>>, vector<1x1x1x4x3xbf16>
    %10 = vector.shape_cast %9 : vector<1x1x1x4x3xbf16> to vector<4x3xbf16>
    %cst_17 = arith.constant dense<0.000000e+00> : vector<8x3xf32>
    %11 = tpu.matmul %8, %10, %cst_17 {dimension_numbers = #tpu.dot_dimension_numbers<[1], [0], [0], [1], [0, 0, 1, 1], [], []>} : vector<8x4xbf16>, vector<4x3xbf16>, vector<8x3xf32> -> vector<8x3xf32>
    %12 = arith.addf %6, %11 : vector<8x3xf32>
    %c0_18 = arith.constant 0 : index
    %c2 = arith.constant 2 : index
    %c0_19 = arith.constant 0 : index
    %c0_20 = arith.constant 0 : index
    %13 = vector.load %arg3[%c0_18, %c2, %c0_19, %c0_20] : memref<1x5x8x4xbf16, #tpu.memory_space<vmem>>, vector<1x1x8x4xbf16>
    %14 = vector.shape_cast %13 : vector<1x1x8x4xbf16> to vector<8x4xbf16>
    %c0_21 = arith.constant 0 : index
    %c0_22 = arith.constant 0 : index
    %c2_23 = arith.constant 2 : index
    %c0_24 = arith.constant 0 : index
    %c0_25 = arith.constant 0 : index
    %15 = vector.load %arg2[%c0_21, %c0_22, %c2_23, %c0_24, %c0_25] : memref<1x1x4x4x4xbf16, #tpu.memory_space<vmem>>, vector<1x1x1x4x3xbf16>
    %16 = vector.shape_cast %15 : vector<1x1x1x4x3xbf16> to vector<4x3xbf16>
    %cst_26 = arith.constant dense<0.000000e+00> : vector<8x3xf32>
    %17 = tpu.matmul %14, %16, %cst_26 {dimension_numbers = #tpu.dot_dimension_numbers<[1], [0], [0], [1], [0, 0, 1, 1], [], []>} : vector<8x4xbf16>, vector<4x3xbf16>, vector<8x3xf32> -> vector<8x3xf32>
    %18 = arith.addf %12, %17 : vector<8x3xf32>
    %c0_27 = arith.constant 0 : index
    %c3 = arith.constant 3 : index
    %c0_28 = arith.constant 0 : index
    %c0_29 = arith.constant 0 : index
    %19 = vector.load %arg3[%c0_27, %c3, %c0_28, %c0_29] : memref<1x5x8x4xbf16, #tpu.memory_space<vmem>>, vector<1x1x8x4xbf16>
    %20 = vector.shape_cast %19 : vector<1x1x8x4xbf16> to vector<8x4xbf16>
    %c0_30 = arith.constant 0 : index
    %c0_31 = arith.constant 0 : index
    %c3_32 = arith.constant 3 : index
    %c0_33 = arith.constant 0 : index
    %c0_34 = arith.constant 0 : index
    %21 = vector.load %arg2[%c0_30, %c0_31, %c3_32, %c0_33, %c0_34] : memref<1x1x4x4x4xbf16, #tpu.memory_space<vmem>>, vector<1x1x1x4x3xbf16>
    %22 = vector.shape_cast %21 : vector<1x1x1x4x3xbf16> to vector<4x3xbf16>
    %cst_35 = arith.constant dense<0.000000e+00> : vector<8x3xf32>
    %23 = tpu.matmul %20, %22, %cst_35 {dimension_numbers = #tpu.dot_dimension_numbers<[1], [0], [0], [1], [0, 0, 1, 1], [], []>} : vector<8x4xbf16>, vector<4x3xbf16>, vector<8x3xf32> -> vector<8x3xf32>
    %24 = arith.addf %18, %23 : vector<8x3xf32>
    %c0_36 = arith.constant 0 : index
    %c4 = arith.constant 4 : index
    %c0_37 = arith.constant 0 : index
    %c0_38 = arith.constant 0 : index
    %25 = vector.load %arg3[%c0_36, %c4, %c0_37, %c0_38] : memref<1x5x8x4xbf16, #tpu.memory_space<vmem>>, vector<1x1x8x4xbf16>
    %26 = vector.shape_cast %25 : vector<1x1x8x4xbf16> to vector<8x4xbf16>
    %c0_39 = arith.constant 0 : index
    %c0_40 = arith.constant 0 : index
    %c0_41 = arith.constant 0 : index
    %c0_42 = arith.constant 0 : index
    %c1_43 = arith.constant 1 : index
    %27 = vector.load %arg2[%c0_39, %c0_40, %c0_41, %c0_42, %c1_43] : memref<1x1x4x4x4xbf16, #tpu.memory_space<vmem>>, vector<1x1x1x4x3xbf16>
    %28 = vector.shape_cast %27 : vector<1x1x1x4x3xbf16> to vector<4x3xbf16>
    %cst_44 = arith.constant dense<0.000000e+00> : vector<8x3xf32>
    %29 = tpu.matmul %26, %28, %cst_44 {dimension_numbers = #tpu.dot_dimension_numbers<[1], [0], [0], [1], [0, 0, 1, 1], [], []>} : vector<8x4xbf16>, vector<4x3xbf16>, vector<8x3xf32> -> vector<8x3xf32>
    %30 = arith.addf %24, %29 : vector<8x3xf32>
    %c0_45 = arith.constant 0 : index
    %c0_46 = arith.constant 0 : index
    %c0_47 = arith.constant 0 : index
    %31 = vector.load %arg4[%c0_45, %c0_46, %c0_47] : memref<1x8x1xf32, #tpu.memory_space<vmem>>, vector<1x8x1xf32>
    %32 = vector.shape_cast %31 : vector<1x8x1xf32> to vector<8x1xf32>
    %33 = vector.broadcast %32 : vector<8x1xf32> to vector<8x3xf32>
    %34 = arith.addf %30, %33 : vector<8x3xf32>
    %35 = arith.truncf %34 : vector<8x3xf32> to vector<8x3xbf16>
    %c0_48 = arith.constant 0 : index
    %c0_49 = arith.constant 0 : index
    %c0_50 = arith.constant 0 : index
    %c0_51 = arith.constant 0 : index
    %36 = vector.load %arg5[%c0_48, %c0_49, %c0_50, %c0_51] : memref<1x1x8x3xbf16, #tpu.memory_space<vmem>>, vector<1x1x8x3xbf16>
    %37 = vector.shape_cast %36 : vector<1x1x8x3xbf16> to vector<8x3xbf16>
    %38 = vector.shape_cast %35 : vector<8x3xbf16> to vector<1x1x8x3xbf16>
    tpu.vector_store %arg5[%c0_48, %c0_49, %c0_50, %c0_51], %38 {strides = array<i32>} : memref<1x1x8x3xbf16, #tpu.memory_space<vmem>>, vector<1x1x8x3xbf16>,
    return
  }
  func.func @transform_0(%arg0: i32, %arg1: i32) -> (i32, i32, i32, i32, i32) {
    %c0_i32 = arith.constant 0 : i32
    %c0_i32_0 = arith.constant 0 : i32
    %c0_i32_1 = arith.constant 0 : i32
    %c0_i32_2 = arith.constant 0 : i32
    return %arg0, %arg1, %c0_i32, %c0_i32_0, %c0_i32_1 : i32, i32, i32, i32, i32
  }
  func.func @transform_1(%arg0: i32, %arg1: i32) -> (i32, i32, i32, i32) {
    %c0_i32 = arith.constant 0 : i32
    %c0_i32_0 = arith.constant 0 : i32
    %c0_i32_1 = arith.constant 0 : i32
    %c0_i32_2 = arith.constant 0 : i32
    return %arg1, %c0_i32, %c0_i32_0, %c0_i32_1 : i32, i32, i32, i32
  }
  func.func @transform_2(%arg0: i32, %arg1: i32) -> (i32, i32, i32) {
    %c0_i32 = arith.constant 0 : i32
    %c0_i32_0 = arith.constant 0 : i32
    %c0_i32_1 = arith.constant 0 : i32
    return %arg1, %c0_i32, %c0_i32_0 : i32, i32, i32
  }
  func.func @transform_3(%arg0: i32, %arg1: i32) -> (i32, i32, i32, i32) {
    %c0_i32 = arith.constant 0 : i32
    %c0_i32_0 = arith.constant 0 : i32
    %c0_i32_1 = arith.constant 0 : i32
    return %arg0, %arg1, %c0_i32, %c0_i32_0 : i32, i32, i32, i32
  }
}

module attributes {stable_mosaic.version = 11 : i64} {
  func.func @_fused_1x1_kernel(%arg0: i32, %arg1: memref<1x64x6xbf16, #tpu.memory_space<vmem>>, %arg2: memref<64x64xbf16, #tpu.memory_space<vmem>>, %arg3: memref<64x1xf32, #tpu.memory_space<vmem>>, %arg4: memref<128x64xbf16, #tpu.memory_space<vmem>>, %arg5: memref<128x1xf32, #tpu.memory_space<vmem>>, %arg6: memref<1x64x6xbf16, #tpu.memory_space<vmem>>, %arg7: memref<1x128x6xbf16, #tpu.memory_space<vmem>>) attributes {dimension_semantics = [#tpu.dimension_semantics<parallel>], iteration_bounds = array<i64: 2>, scalar_prefetch = 0 : i64, scratch_operands = 0 : i64, tpu.core_type = #tpu.core_type<tc>, window_params = [{transform_indices = @transform_0, window_bounds = array<i64: 1, 64, 6>}, {pipeline_mode = #tpu.pipeline_mode<synchronous>, transform_indices = @transform_1, window_bounds = array<i64: 64, 64>}, {pipeline_mode = #tpu.pipeline_mode<synchronous>, transform_indices = @transform_2, window_bounds = array<i64: 64, 1>}, {pipeline_mode = #tpu.pipeline_mode<synchronous>, transform_indices = @transform_3, window_bounds = array<i64: 128, 64>}, {pipeline_mode = #tpu.pipeline_mode<synchronous>, transform_indices = @transform_4, window_bounds = array<i64: 128, 1>}, {transform_indices = @transform_5, window_bounds = array<i64: 1, 64, 6>}, {transform_indices = @transform_6, window_bounds = array<i64: 1, 128, 6>}]} {
    %c0 = arith.constant 0 : index
    %c0_0 = arith.constant 0 : index
    %0 = vector.load %arg2[%c0, %c0_0] : memref<64x64xbf16, #tpu.memory_space<vmem>>, vector<64x64xbf16>
    %c0_1 = arith.constant 0 : index
    %c0_2 = arith.constant 0 : index
    %c0_3 = arith.constant 0 : index
    %1 = vector.load %arg1[%c0_1, %c0_2, %c0_3] : memref<1x64x6xbf16, #tpu.memory_space<vmem>>, vector<1x64x6xbf16>
    %2 = vector.shape_cast %1 : vector<1x64x6xbf16> to vector<64x6xbf16>
    %cst = arith.constant dense<0.000000e+00> : vector<64x6xf32>
    %3 = tpu.matmul %0, %2, %cst {dimension_numbers = #tpu.dot_dimension_numbers<[1], [0], [0], [1], [0, 0, 1, 1], [], []>} : vector<64x64xbf16>, vector<64x6xbf16>, vector<64x6xf32> -> vector<64x6xf32>
    %c0_4 = arith.constant 0 : index
    %c0_5 = arith.constant 0 : index
    %4 = vector.load %arg3[%c0_4, %c0_5] : memref<64x1xf32, #tpu.memory_space<vmem>>, vector<64x1xf32>
    %5 = vector.broadcast %4 : vector<64x1xf32> to vector<64x6xf32>
    %6 = arith.addf %3, %5 : vector<64x6xf32>
    %cst_6 = arith.constant 0.000000e+00 : f32
    %7 = vector.broadcast %cst_6 : f32 to vector<64x6xf32>
    %8 = arith.cmpf oge, %6, %7 : vector<64x6xf32>
    %cst_7 = arith.constant 2.000000e-01 : f32
    %9 = vector.broadcast %cst_7 : f32 to vector<64x6xf32>
    %10 = arith.mulf %9, %6 : vector<64x6xf32>
    %11 = arith.select %8, %6, %10 : vector<64x6xi1>, vector<64x6xf32>
    %12 = arith.truncf %11 : vector<64x6xf32> to vector<64x6xbf16>
    %c0_8 = arith.constant 0 : index
    %c0_9 = arith.constant 0 : index
    %c0_10 = arith.constant 0 : index
    %13 = vector.load %arg6[%c0_8, %c0_9, %c0_10] : memref<1x64x6xbf16, #tpu.memory_space<vmem>>, vector<1x64x6xbf16>
    %14 = vector.shape_cast %13 : vector<1x64x6xbf16> to vector<64x6xbf16>
    %15 = vector.shape_cast %12 : vector<64x6xbf16> to vector<1x64x6xbf16>
    tpu.vector_store %arg6[%c0_8, %c0_9, %c0_10], %15 {strides = array<i32>} : memref<1x64x6xbf16, #tpu.memory_space<vmem>>, vector<1x64x6xbf16>,
    %c0_11 = arith.constant 0 : index
    %c0_12 = arith.constant 0 : index
    %16 = vector.load %arg4[%c0_11, %c0_12] : memref<128x64xbf16, #tpu.memory_space<vmem>>, vector<128x64xbf16>
    %17 = arith.truncf %11 : vector<64x6xf32> to vector<64x6xbf16>
    %cst_13 = arith.constant dense<0.000000e+00> : vector<128x6xf32>
    %18 = tpu.matmul %16, %17, %cst_13 {dimension_numbers = #tpu.dot_dimension_numbers<[1], [0], [0], [1], [0, 0, 1, 1], [], []>} : vector<128x64xbf16>, vector<64x6xbf16>, vector<128x6xf32> -> vector<128x6xf32>
    %c0_14 = arith.constant 0 : index
    %c0_15 = arith.constant 0 : index
    %19 = vector.load %arg5[%c0_14, %c0_15] : memref<128x1xf32, #tpu.memory_space<vmem>>, vector<128x1xf32>
    %20 = vector.broadcast %19 : vector<128x1xf32> to vector<128x6xf32>
    %21 = arith.addf %18, %20 : vector<128x6xf32>
    %cst_16 = arith.constant 0.000000e+00 : f32
    %22 = vector.broadcast %cst_16 : f32 to vector<128x6xf32>
    %23 = arith.cmpf oge, %21, %22 : vector<128x6xf32>
    %cst_17 = arith.constant 2.000000e-01 : f32
    %24 = vector.broadcast %cst_17 : f32 to vector<128x6xf32>
    %25 = arith.mulf %24, %21 : vector<128x6xf32>
    %26 = arith.select %23, %21, %25 : vector<128x6xi1>, vector<128x6xf32>
    %27 = arith.truncf %26 : vector<128x6xf32> to vector<128x6xbf16>
    %c0_18 = arith.constant 0 : index
    %c0_19 = arith.constant 0 : index
    %c0_20 = arith.constant 0 : index
    %28 = vector.load %arg7[%c0_18, %c0_19, %c0_20] : memref<1x128x6xbf16, #tpu.memory_space<vmem>>, vector<1x128x6xbf16>
    %29 = vector.shape_cast %28 : vector<1x128x6xbf16> to vector<128x6xbf16>
    %30 = vector.shape_cast %27 : vector<128x6xbf16> to vector<1x128x6xbf16>
    tpu.vector_store %arg7[%c0_18, %c0_19, %c0_20], %30 {strides = array<i32>} : memref<1x128x6xbf16, #tpu.memory_space<vmem>>, vector<1x128x6xbf16>,
    return
  }
  func.func @transform_0(%arg0: i32) -> (i32, i32, i32) {
    %c0_i32 = arith.constant 0 : i32
    %c0_i32_0 = arith.constant 0 : i32
    %c0_i32_1 = arith.constant 0 : i32
    return %arg0, %c0_i32, %c0_i32_0 : i32, i32, i32
  }
  func.func @transform_1(%arg0: i32) -> (i32, i32) {
    %c0_i32 = arith.constant 0 : i32
    %c0_i32_0 = arith.constant 0 : i32
    %c0_i32_1 = arith.constant 0 : i32
    return %c0_i32, %c0_i32_0 : i32, i32
  }
  func.func @transform_2(%arg0: i32) -> (i32, i32) {
    %c0_i32 = arith.constant 0 : i32
    %c0_i32_0 = arith.constant 0 : i32
    %c0_i32_1 = arith.constant 0 : i32
    return %c0_i32, %c0_i32_0 : i32, i32
  }
  func.func @transform_3(%arg0: i32) -> (i32, i32) {
    %c0_i32 = arith.constant 0 : i32
    %c0_i32_0 = arith.constant 0 : i32
    %c0_i32_1 = arith.constant 0 : i32
    return %c0_i32, %c0_i32_0 : i32, i32
  }
  func.func @transform_4(%arg0: i32) -> (i32, i32) {
    %c0_i32 = arith.constant 0 : i32
    %c0_i32_0 = arith.constant 0 : i32
    %c0_i32_1 = arith.constant 0 : i32
    return %c0_i32, %c0_i32_0 : i32, i32
  }
  func.func @transform_5(%arg0: i32) -> (i32, i32, i32) {
    %c0_i32 = arith.constant 0 : i32
    %c0_i32_0 = arith.constant 0 : i32
    %c0_i32_1 = arith.constant 0 : i32
    return %arg0, %c0_i32, %c0_i32_0 : i32, i32, i32
  }
  func.func @transform_6(%arg0: i32) -> (i32, i32, i32) {
    %c0_i32 = arith.constant 0 : i32
    %c0_i32_0 = arith.constant 0 : i32
    %c0_i32_1 = arith.constant 0 : i32
    return %arg0, %c0_i32, %c0_i32_0 : i32, i32, i32
  }
}

module attributes {stable_mosaic.version = 11 : i64} {
  func.func @kernel(%arg0: i32, %arg1: i32, %arg2: memref<1x1x4x4x3xbf16, #tpu.memory_space<vmem>>, %arg3: memref<1x5x8x4xbf16, #tpu.memory_space<vmem>>, %arg4: memref<1x8x1xf32, #tpu.memory_space<vmem>>, %arg5: memref<1x1x8x2xbf16, #tpu.memory_space<vmem>>) attributes {dimension_semantics = [#tpu.dimension_semantics<parallel>, #tpu.dimension_semantics<parallel>], iteration_bounds = array<i64: 2, 8>, scalar_prefetch = 0 : i64, scratch_operands = 0 : i64, tpu.core_type = #tpu.core_type<tc>, window_params = [{transform_indices = @transform_0, window_bounds = array<i64: 1, 1, 4, 4, 3>}, {transform_indices = @transform_1, window_bounds = array<i64: 1, 5, 8, 4>}, {transform_indices = @transform_2, window_bounds = array<i64: 1, 8, 1>}, {transform_indices = @transform_3, window_bounds = array<i64: 1, 1, 8, 2>}]} {
    %cst = arith.constant 0.000000e+00 : f32
    %0 = vector.broadcast %cst : f32 to vector<8x2xf32>
    %c0 = arith.constant 0 : index
    %c0_0 = arith.constant 0 : index
    %c0_1 = arith.constant 0 : index
    %c0_2 = arith.constant 0 : index
    %1 = vector.load %arg3[%c0, %c0_0, %c0_1, %c0_2] : memref<1x5x8x4xbf16, #tpu.memory_space<vmem>>, vector<1x1x8x4xbf16>
    %2 = vector.shape_cast %1 : vector<1x1x8x4xbf16> to vector<8x4xbf16>
    %c0_3 = arith.constant 0 : index
    %c0_4 = arith.constant 0 : index
    %c0_5 = arith.constant 0 : index
    %c0_6 = arith.constant 0 : index
    %c0_7 = arith.constant 0 : index
    %3 = vector.load %arg2[%c0_3, %c0_4, %c0_5, %c0_6, %c0_7] : memref<1x1x4x4x3xbf16, #tpu.memory_space<vmem>>, vector<1x1x1x4x2xbf16>
    %4 = vector.shape_cast %3 : vector<1x1x1x4x2xbf16> to vector<4x2xbf16>
    %cst_8 = arith.constant dense<0.000000e+00> : vector<8x2xf32>
    %5 = tpu.matmul %2, %4, %cst_8 {dimension_numbers = #tpu.dot_dimension_numbers<[1], [0], [0], [1], [0, 0, 1, 1], [], []>} : vector<8x4xbf16>, vector<4x2xbf16>, vector<8x2xf32> -> vector<8x2xf32>
    %6 = arith.addf %0, %5 : vector<8x2xf32>
    %c0_9 = arith.constant 0 : index
    %c1 = arith.constant 1 : index
    %c0_10 = arith.constant 0 : index
    %c0_11 = arith.constant 0 : index
    %7 = vector.load %arg3[%c0_9, %c1, %c0_10, %c0_11] : memref<1x5x8x4xbf16, #tpu.memory_space<vmem>>, vector<1x1x8x4xbf16>
    %8 = vector.shape_cast %7 : vector<1x1x8x4xbf16> to vector<8x4xbf16>
    %c0_12 = arith.constant 0 : index
    %c0_13 = arith.constant 0 : index
    %c1_14 = arith.constant 1 : index
    %c0_15 = arith.constant 0 : index
    %c0_16 = arith.constant 0 : index
    %9 = vector.load %arg2[%c0_12, %c0_13, %c1_14, %c0_15, %c0_16] : memref<1x1x4x4x3xbf16, #tpu.memory_space<vmem>>, vector<1x1x1x4x2xbf16>
    %10 = vector.shape_cast %9 : vector<1x1x1x4x2xbf16> to vector<4x2xbf16>
    %cst_17 = arith.constant dense<0.000000e+00> : vector<8x2xf32>
    %11 = tpu.matmul %8, %10, %cst_17 {dimension_numbers = #tpu.dot_dimension_numbers<[1], [0], [0], [1], [0, 0, 1, 1], [], []>} : vector<8x4xbf16>, vector<4x2xbf16>, vector<8x2xf32> -> vector<8x2xf32>
    %12 = arith.addf %6, %11 : vector<8x2xf32>
    %c0_18 = arith.constant 0 : index
    %c2 = arith.constant 2 : index
    %c0_19 = arith.constant 0 : index
    %c0_20 = arith.constant 0 : index
    %13 = vector.load %arg3[%c0_18, %c2, %c0_19, %c0_20] : memref<1x5x8x4xbf16, #tpu.memory_space<vmem>>, vector<1x1x8x4xbf16>
    %14 = vector.shape_cast %13 : vector<1x1x8x4xbf16> to vector<8x4xbf16>
    %c0_21 = arith.constant 0 : index
    %c0_22 = arith.constant 0 : index
    %c2_23 = arith.constant 2 : index
    %c0_24 = arith.constant 0 : index
    %c0_25 = arith.constant 0 : index
    %15 = vector.load %arg2[%c0_21, %c0_22, %c2_23, %c0_24, %c0_25] : memref<1x1x4x4x3xbf16, #tpu.memory_space<vmem>>, vector<1x1x1x4x2xbf16>
    %16 = vector.shape_cast %15 : vector<1x1x1x4x2xbf16> to vector<4x2xbf16>
    %cst_26 = arith.constant dense<0.000000e+00> : vector<8x2xf32>
    %17 = tpu.matmul %14, %16, %cst_26 {dimension_numbers = #tpu.dot_dimension_numbers<[1], [0], [0], [1], [0, 0, 1, 1], [], []>} : vector<8x4xbf16>, vector<4x2xbf16>, vector<8x2xf32> -> vector<8x2xf32>
    %18 = arith.addf %12, %17 : vector<8x2xf32>
    %c0_27 = arith.constant 0 : index
    %c3 = arith.constant 3 : index
    %c0_28 = arith.constant 0 : index
    %c0_29 = arith.constant 0 : index
    %19 = vector.load %arg3[%c0_27, %c3, %c0_28, %c0_29] : memref<1x5x8x4xbf16, #tpu.memory_space<vmem>>, vector<1x1x8x4xbf16>
    %20 = vector.shape_cast %19 : vector<1x1x8x4xbf16> to vector<8x4xbf16>
    %c0_30 = arith.constant 0 : index
    %c0_31 = arith.constant 0 : index
    %c3_32 = arith.constant 3 : index
    %c0_33 = arith.constant 0 : index
    %c0_34 = arith.constant 0 : index
    %21 = vector.load %arg2[%c0_30, %c0_31, %c3_32, %c0_33, %c0_34] : memref<1x1x4x4x3xbf16, #tpu.memory_space<vmem>>, vector<1x1x1x4x2xbf16>
    %22 = vector.shape_cast %21 : vector<1x1x1x4x2xbf16> to vector<4x2xbf16>
    %cst_35 = arith.constant dense<0.000000e+00> : vector<8x2xf32>
    %23 = tpu.matmul %20, %22, %cst_35 {dimension_numbers = #tpu.dot_dimension_numbers<[1], [0], [0], [1], [0, 0, 1, 1], [], []>} : vector<8x4xbf16>, vector<4x2xbf16>, vector<8x2xf32> -> vector<8x2xf32>
    %24 = arith.addf %18, %23 : vector<8x2xf32>
    %c0_36 = arith.constant 0 : index
    %c4 = arith.constant 4 : index
    %c0_37 = arith.constant 0 : index
    %c0_38 = arith.constant 0 : index
    %25 = vector.load %arg3[%c0_36, %c4, %c0_37, %c0_38] : memref<1x5x8x4xbf16, #tpu.memory_space<vmem>>, vector<1x1x8x4xbf16>
    %26 = vector.shape_cast %25 : vector<1x1x8x4xbf16> to vector<8x4xbf16>
    %c0_39 = arith.constant 0 : index
    %c0_40 = arith.constant 0 : index
    %c0_41 = arith.constant 0 : index
    %c0_42 = arith.constant 0 : index
    %c1_43 = arith.constant 1 : index
    %27 = vector.load %arg2[%c0_39, %c0_40, %c0_41, %c0_42, %c1_43] : memref<1x1x4x4x3xbf16, #tpu.memory_space<vmem>>, vector<1x1x1x4x2xbf16>
    %28 = vector.shape_cast %27 : vector<1x1x1x4x2xbf16> to vector<4x2xbf16>
    %cst_44 = arith.constant dense<0.000000e+00> : vector<8x2xf32>
    %29 = tpu.matmul %26, %28, %cst_44 {dimension_numbers = #tpu.dot_dimension_numbers<[1], [0], [0], [1], [0, 0, 1, 1], [], []>} : vector<8x4xbf16>, vector<4x2xbf16>, vector<8x2xf32> -> vector<8x2xf32>
    %30 = arith.addf %24, %29 : vector<8x2xf32>
    %c0_45 = arith.constant 0 : index
    %c0_46 = arith.constant 0 : index
    %c0_47 = arith.constant 0 : index
    %31 = vector.load %arg4[%c0_45, %c0_46, %c0_47] : memref<1x8x1xf32, #tpu.memory_space<vmem>>, vector<1x8x1xf32>
    %32 = vector.shape_cast %31 : vector<1x8x1xf32> to vector<8x1xf32>
    %33 = vector.broadcast %32 : vector<8x1xf32> to vector<8x2xf32>
    %34 = arith.addf %30, %33 : vector<8x2xf32>
    %35 = arith.truncf %34 : vector<8x2xf32> to vector<8x2xbf16>
    %c0_48 = arith.constant 0 : index
    %c0_49 = arith.constant 0 : index
    %c0_50 = arith.constant 0 : index
    %c0_51 = arith.constant 0 : index
    %36 = vector.load %arg5[%c0_48, %c0_49, %c0_50, %c0_51] : memref<1x1x8x2xbf16, #tpu.memory_space<vmem>>, vector<1x1x8x2xbf16>
    %37 = vector.shape_cast %36 : vector<1x1x8x2xbf16> to vector<8x2xbf16>
    %38 = vector.shape_cast %35 : vector<8x2xbf16> to vector<1x1x8x2xbf16>
    tpu.vector_store %arg5[%c0_48, %c0_49, %c0_50, %c0_51], %38 {strides = array<i32>} : memref<1x1x8x2xbf16, #tpu.memory_space<vmem>>, vector<1x1x8x2xbf16>,
    return
  }
  func.func @transform_0(%arg0: i32, %arg1: i32) -> (i32, i32, i32, i32, i32) {
    %c0_i32 = arith.constant 0 : i32
    %c0_i32_0 = arith.constant 0 : i32
    %c0_i32_1 = arith.constant 0 : i32
    %c0_i32_2 = arith.constant 0 : i32
    return %arg0, %arg1, %c0_i32, %c0_i32_0, %c0_i32_1 : i32, i32, i32, i32, i32
  }
  func.func @transform_1(%arg0: i32, %arg1: i32) -> (i32, i32, i32, i32) {
    %c0_i32 = arith.constant 0 : i32
    %c0_i32_0 = arith.constant 0 : i32
    %c0_i32_1 = arith.constant 0 : i32
    %c0_i32_2 = arith.constant 0 : i32
    return %arg1, %c0_i32, %c0_i32_0, %c0_i32_1 : i32, i32, i32, i32
  }
  func.func @transform_2(%arg0: i32, %arg1: i32) -> (i32, i32, i32) {
    %c0_i32 = arith.constant 0 : i32
    %c0_i32_0 = arith.constant 0 : i32
    %c0_i32_1 = arith.constant 0 : i32
    return %arg1, %c0_i32, %c0_i32_0 : i32, i32, i32
  }
  func.func @transform_3(%arg0: i32, %arg1: i32) -> (i32, i32, i32, i32) {
    %c0_i32 = arith.constant 0 : i32
    %c0_i32_0 = arith.constant 0 : i32
    %c0_i32_1 = arith.constant 0 : i32
    return %arg0, %arg1, %c0_i32, %c0_i32_0 : i32, i32, i32, i32
  }
}

</mosaic_0001>

<bundles_post_ra>
// kernel: disc_layer_forward.6
= control target key start
LH: loop header
LB: loop body
LE: loop exit
PB: predicated region body
PF: predicated region fallthrough
CT: control target
= control target key end

     0   :  { %s1196_s12 = smov 0   ;;  %s1198_s13 = smov 0   ;;  %s1390_s0 = inlined_call_operand.vmem [shape: bf16[2,1,1,128,64], index: 0, kind: input, shape index: {}]   ;;  %s1391_s1 = inlined_call_operand.vmem [shape: bf16[1,7,4,128], index: 1, kind: input, shape index: {}]   ;;  %s1392_s2 = inlined_call_operand.vmem [shape: f32[1,4,1], index: 2, kind: input, shape index: {}]   ;;  %s1393_s3 = inlined_call_operand.vmem [shape: bf16[2,1,4,58], index: 3, kind: output, shape index: {}]  }
   0x1   :  { %s1200_s14 = smov 0  }
   0x2 LB: > { %s25_s15 = sadd.s32 1, %s1161_s13  ;;  %p877_p0 = scmp.ge.s32.totalorder %s1165_s14, 1  ;;  %s1165_s14 = sphi %s1200_s14, %s13_s14   ;;  %s1161_s13 = sphi %s1198_s13, %s1395_s13   ;;  %s1157_s12 = sphi %s1196_s12, %s1394_s12  }
   0x3   : > { %p27_p1 = scmp.ge.s32.totalorder %s25_s15, 2  ;;  %p176_p2 = scmp.lt.s32.totalorder %s1165_s14, 3 }
   0x5   : > { %s1397_s15 = smov (%p27_p1, %s25_s15), 0  ;;  %p177_p3 = pnand %p877_p0, %p176_p2 }
   0x6   : > { %p215_p4 = scmp.lt.s32.totalorder (!%p177_p3), %s1157_s12, 1  ;;  %v1167_v0 = vmov (!%p177_p3), 0.0   ;;  %s1168_s20 = smov (!%p177_p3), 127   ;;  %vm1170_vm0 = vmmov (!%p177_p3), 0   ;;  %v241_v9 = vld [vmem:[%s1391_s1] sm:$0x3] (!%p177_p3) }
   0x7   : > { %180 = sbr.rel (%p177_p3) target bundleno = 482 (0x1e2), region = 32  ;;  %961 = vmatprep.subr.bf16.mxu0 (!%p177_p3), %v1167_v0  ;;  %981 = vmatprep.subr.bf16.mxu1 (!%p177_p3), %v1167_v0  ;;  %s1169_s21 = smov (!%p177_p3), 126   ;;  %v747_v11 = vld [vmem:[%s1392_s2] sm:$0xf] (!%p177_p3)  ;;  %v1175_v12 = vmov (!%p177_p3), 0   ;;  %vm758_vm2 = vcmask (!%p177_p3), 467968  }
   0x8   : > { %977 = vmatprep.mubr.msk.bf16.mxu0 (!%p177_p3), %vm1170_vm0, %v1167_v0  ;;  %997 = vmatprep.mubr.msk.bf16.mxu1 (!%p177_p3), %vm1170_vm0, %v1167_v0  ;;  %s1171_s24 = smov (!%p177_p3), 125   ;;  %s1172_s25 = smov (!%p177_p3), 124   ;;  %v881_v27 = vld [vmem:[%s1391_s1 + $0x2] sm:$0x3] (!%p177_p3)  ;;  %v890_v42 = vld [vmem:[%s1391_s1 + $0x4] sm:$0x3] (!%p177_p3) }
   0x9   : > { %s1173_s26 = smov (!%p177_p3), 123   ;;  %s1174_s27 = smov (!%p177_p3), 122   ;;  %1134 = vset.pattern.permute.xlu0 (!%p177_p3), %v1175_v12  ;;  %v891_v43 = vld [vmem:[%s1391_s1 + $0x6] sm:$0x3] (!%p177_p3)  ;;  %v892_v58 = vld [vmem:[%s1391_s1 + $0x8] sm:$0x3] (!%p177_p3) }
   0xa   : > { %v893_v59 = vld [vmem:[%s1391_s1 + $0xa] sm:$0x3] (!%p177_p3) }
   0xe   : > { %s1399_s12 = smov (!%p215_p4, %s1157_s12), 1 }
   0xf   : > { %s897_s16 = sshll.u32 %s1399_s12, 6 }
  0x10   : > { %s223_s19 = scalar_lea.vmem %s1390_s0, %s897_s16 }
  0x11   : > { %v1222_v1 = vld [vmem:[%s223_s19] sm:$0xff]   ;;  %v1224_v2 = vld [vmem:[%s223_s19 + $0x8] sm:$0xff]   ;;  %v1227_v3 = vld [vmem:[%s223_s19 + $0x10] sm:$0xff]  }
  0x12   : > { %300 = vrot.lane.b32.xlu0 %v1222_v1, %s1168_s20  ;;  %982 = vmatpush3.bf16.msra.mxu1 %v1222_v1  ;;  %v1232_v4 = vld [vmem:[%s223_s19 + $0x18] sm:$0xff]   ;;  %v1235_v5 = vld [vmem:[%s223_s19 + $0x20] sm:$0xff]   ;;  %v1240_v6 = vld [vmem:[%s223_s19 + $0x28] sm:$0xff]  }
  0x13   : > { %983 = vmatprep.subr.bf16.mxu1 %v1167_v0  ;;  %304 = vrot.lane.b32.xlu1 %v1227_v3, %s1168_s20  ;;  %v1243_v7 = vld [vmem:[%s223_s19 + $0x30] sm:$0xff]   ;;  %v1142_v8 = vld [vmem:[%s223_s19 + $0x38] sm:$0xff]   ;;  %s880_s19 = sshll.u32 %s1399_s12, 1 }
  0x14   : > { %s239_s22 = scalar_lea.vmem %s1393_s3, %s880_s19 }
  0x16   : > { %302 = vrot.lane.b32.xlu0 %v1224_v2, %s1168_s20  ;;  %984 = vmatpush3.bf16.msra.mxu1 %v1224_v2 }
  0x17   : > { %985 = vmatprep.subr.bf16.mxu1 %v1167_v0  ;;  %306 = vrot.lane.b32.xlu1 %v1232_v4, %s1168_s20 }
  0x1a   : > { %308 = vrot.lane.b32.xlu0 %v1235_v5, %s1168_s20  ;;  %986 = vmatpush3.bf16.msra.mxu1 %v1227_v3 }
  0x1b   : > { %987 = vmatprep.subr.bf16.mxu1 %v1167_v0  ;;  %310 = vrot.lane.b32.xlu1 %v1240_v6, %s1168_s20 }
  0x1e   : > { %312 = vrot.lane.b32.xlu0 %v1243_v7, %s1168_s20  ;;  %988 = vmatpush3.bf16.msra.mxu1 %v1232_v4 }
  0x1f   : > { %989 = vmatprep.subr.bf16.mxu1 %v1167_v0  ;;  %314 = vrot.lane.b32.xlu1 %v1142_v8, %s1168_s20 }
  0x22   : > { %414 = vrot.lane.b32.xlu0 %v1222_v1, %s1169_s21  ;;  %990 = vmatpush3.bf16.msra.mxu1 %v1235_v5 }
  0x23   : > { %991 = vmatprep.subr.bf16.mxu1 %v1167_v0  ;;  %416 = vrot.lane.b32.xlu1 %v1224_v2, %s1169_s21 }
  0x26   : > { %418 = vrot.lane.b32.xlu0 %v1227_v3, %s1169_s21  ;;  %992 = vmatpush3.bf16.msra.mxu1 %v1240_v6 }
  0x27   : > { %993 = vmatprep.subr.bf16.mxu1 %v1167_v0  ;;  %420 = vrot.lane.b32.xlu1 %v1232_v4, %s1169_s21 }
  0x2a   : > { %422 = vrot.lane.b32.xlu0 %v1235_v5, %s1169_s21  ;;  %994 = vmatpush3.bf16.msra.mxu1 %v1243_v7 }
  0x2b   : > { %995 = vmatprep.subr.bf16.mxu1 %v1167_v0  ;;  %424 = vrot.lane.b32.xlu1 %v1240_v6, %s1169_s21 }
  0x2e   : > { %426 = vrot.lane.b32.xlu0 %v1243_v7, %s1169_s21  ;;  %996 = vmatpush3.bf16.msra.mxu1 %v1142_v8 }
  0x2f   : > { %1021 = vmatprep.subr.bf16.mxu1 %v1167_v0  ;;  %428 = vrot.lane.b32.xlu1 %v1142_v8, %s1169_s21 }
  0x31   : > { %998 = vmatmul.mubr.bf16.vlgmr.msra.gmra.mrb[0].mxu1 %v241_v9 }
  0x32   : > { %481 = vrot.lane.b32.xlu0 %v1222_v1, %s1171_s24  ;;  %1037 = vmatprep.mubr.msk.bf16.mxu1 %vm1170_vm0, %v1167_v0 }
  0x33   : > { %548 = vrot.lane.b32.xlu1 %v1222_v1, %s1172_s25 }
  0x36   : > { %483 = vrot.lane.b32.xlu0 %v1224_v2, %s1171_s24 }
  0x37   : > { %550 = vrot.lane.b32.xlu1 %v1224_v2, %s1172_s25 }
  0x3a   : > { %485 = vrot.lane.b32.xlu0 %v1227_v3, %s1171_s24 }
  0x3b   : > { %552 = vrot.lane.b32.xlu1 %v1227_v3, %s1172_s25 }
  0x3e   : > { %487 = vrot.lane.b32.xlu0 %v1232_v4, %s1171_s24 }
  0x3f   : > { %554 = vrot.lane.b32.xlu1 %v1232_v4, %s1172_s25 }
  0x42   : > { %489 = vrot.lane.b32.xlu0 %v1235_v5, %s1171_s24 }
  0x43   : > { %556 = vrot.lane.b32.xlu1 %v1235_v5, %s1172_s25 }
  0x46   : > { %491 = vrot.lane.b32.xlu0 %v1240_v6, %s1171_s24 }
  0x47   : > { %558 = vrot.lane.b32.xlu1 %v1240_v6, %s1172_s25 }
  0x4a   : > { %493 = vrot.lane.b32.xlu0 %v1243_v7, %s1171_s24 }
  0x4b   : > { %560 = vrot.lane.b32.xlu1 %v1243_v7, %s1172_s25 }
  0x4e   : > { %495 = vrot.lane.b32.xlu0 %v1142_v8, %s1171_s24 }
  0x4f   : > { %562 = vrot.lane.b32.xlu1 %v1142_v8, %s1172_s25 }
  0x52   : > { %615 = vrot.lane.b32.xlu0 %v1222_v1, %s1173_s26 }
  0x53   : > { %682 = vrot.lane.b32.xlu1 %v1222_v1, %s1174_s27 }
  0x56   : > { %617 = vrot.lane.b32.xlu0 %v1224_v2, %s1173_s26 }
  0x57   : > { %684 = vrot.lane.b32.xlu1 %v1224_v2, %s1174_s27  ;;  %v894_v2 = vld [vmem:[%s1391_s1 + $0xc] sm:$0x3] }
  0x5a   : > { %619 = vrot.lane.b32.xlu0 %v1227_v3, %s1173_s26 }
  0x5b   : > { %686 = vrot.lane.b32.xlu1 %v1227_v3, %s1174_s27 }
  0x5e   : > { %621 = vrot.lane.b32.xlu0 %v1232_v4, %s1173_s26 }
  0x5f   : > { %688 = vrot.lane.b32.xlu1 %v1232_v4, %s1174_s27 }
  0x62   : > { %623 = vrot.lane.b32.xlu0 %v1235_v5, %s1173_s26 }
  0x63   : > { %690 = vrot.lane.b32.xlu1 %v1235_v5, %s1174_s27 }
  0x66   : > { %625 = vrot.lane.b32.xlu0 %v1240_v6, %s1173_s26 }
  0x67   : > { %692 = vrot.lane.b32.xlu1 %v1240_v6, %s1174_s27 }
  0x6a   : > { %627 = vrot.lane.b32.xlu0 %v1243_v7, %s1173_s26 }
  0x6b   : > { %694 = vrot.lane.b32.xlu1 %v1243_v7, %s1174_s27 }
  0x6e   : > { %629 = vrot.lane.b32.xlu0 %v1142_v8, %s1173_s26 }
  0x6f   : > { %696 = vrot.lane.b32.xlu1 %v1142_v8, %s1174_s27 }
  0x72   : > { %750 = vperm.xlu0 %1134, %v747_v11  }
  0x84   : > { %v301_v10 = vpop.permute.xlu0 %300 }
  0x85   : > { %962 = vmatpush3.bf16.msra.mxu0 %v301_v10  ;;  %v305_v13 = vpop.permute.xlu1 %304 }
  0x86   : > { %963 = vmatprep.subr.bf16.mxu0 %v1167_v0 }
  0x88   : > { %v303_v14 = vpop.permute.xlu0 %302 }
  0x89   : > { %964 = vmatpush3.bf16.msra.mxu0 %v303_v14  ;;  %v307_v15 = vpop.permute.xlu1 %306 }
  0x8a   : > { %965 = vmatprep.subr.bf16.mxu0 %v1167_v0 }
  0x8c   : > { %v309_v16 = vpop.permute.xlu0 %308 }
  0x8d   : > { %966 = vmatpush3.bf16.msra.mxu0 %v305_v13  ;;  %v311_v17 = vpop.permute.xlu1 %310 }
  0x8e   : > { %967 = vmatprep.subr.bf16.mxu0 %v1167_v0 }
  0x90   : > { %v313_v18 = vpop.permute.xlu0 %312 }
  0x91   : > { %968 = vmatpush3.bf16.msra.mxu0 %v307_v15  ;;  %v315_v19 = vpop.permute.xlu1 %314 }
  0x92   : > { %969 = vmatprep.subr.bf16.mxu0 %v1167_v0 }
  0x94   : > { %v415_v20 = vpop.permute.xlu0 %414 }
  0x95   : > { %970 = vmatpush3.bf16.msra.mxu0 %v309_v16  ;;  %v417_v21 = vpop.permute.xlu1 %416 }
  0x96   : > { %971 = vmatprep.subr.bf16.mxu0 %v1167_v0 }
  0x98   : > { %v419_v22 = vpop.permute.xlu0 %418 }
  0x99   : > { %972 = vmatpush3.bf16.msra.mxu0 %v311_v17  ;;  %v421_v23 = vpop.permute.xlu1 %420 }
  0x9a   : > { %973 = vmatprep.subr.bf16.mxu0 %v1167_v0 }
  0x9c   : > { %v423_v24 = vpop.permute.xlu0 %422 }
  0x9d   : > { %974 = vmatpush3.bf16.msra.mxu0 %v313_v18  ;;  %v425_v25 = vpop.permute.xlu1 %424 }
  0x9e   : > { %975 = vmatprep.subr.bf16.mxu0 %v1167_v0 }
  0xa0   : > { %v427_v26 = vpop.permute.xlu0 %426 }
  0xa1   : > { %976 = vmatpush3.bf16.msra.mxu0 %v315_v19  ;;  %v429_v28 = vpop.permute.xlu1 %428 }
  0xa2   : > { %1001 = vmatprep.subr.bf16.mxu0 %v1167_v0 }
  0xa4   : > { %978 = vmatmul.mubr.bf16.vlgmr.msra.gmra.mrb[0].mxu0 %v881_v27  ;;  %v482_v29 = vpop.permute.xlu0 %481 }
  0xa5   : > { %1002 = vmatpush3.bf16.msra.mxu0 %v415_v20  ;;  %1022 = vmatpush3.bf16.msra.mxu1 %v482_v29  ;;  %v549_v30 = vpop.permute.xlu1 %548 }
  0xa6   : > { %1003 = vmatprep.subr.bf16.mxu0 %v1167_v0  ;;  %1023 = vmatprep.subr.bf16.mxu1 %v1167_v0 }
  0xa7   : > { %1017 = vmatprep.mubr.msk.bf16.mxu0 %vm1170_vm0, %v1167_v0 }
  0xa8   : > { %v484_v31 = vpop.permute.xlu0 %483 }
  0xa9   : > { %1004 = vmatpush3.bf16.msra.mxu0 %v417_v21  ;;  %1024 = vmatpush3.bf16.msra.mxu1 %v484_v31  ;;  %v551_v32 = vpop.permute.xlu1 %550 }
  0xaa   : > { %1005 = vmatprep.subr.bf16.mxu0 %v1167_v0  ;;  %1025 = vmatprep.subr.bf16.mxu1 %v1167_v0 }
  0xac   : > { %v486_v33 = vpop.permute.xlu0 %485 }
  0xad   : > { %1006 = vmatpush3.bf16.msra.mxu0 %v419_v22  ;;  %1026 = vmatpush3.bf16.msra.mxu1 %v486_v33  ;;  %v553_v35 = vpop.permute.xlu1 %552 }
  0xae   : > { %1007 = vmatprep.subr.bf16.mxu0 %v1167_v0  ;;  %1027 = vmatprep.subr.bf16.mxu1 %v1167_v0 }
  0xb0   : > { %v488_v34 = vpop.permute.xlu0 %487 }
  0xb1   : > { %1008 = vmatpush3.bf16.msra.mxu0 %v421_v23  ;;  %1028 = vmatpush3.bf16.msra.mxu1 %v488_v34  ;;  %v555_v37 = vpop.permute.xlu1 %554 }
  0xb2   : > { %1009 = vmatprep.subr.bf16.mxu0 %v1167_v0  ;;  %1029 = vmatprep.subr.bf16.mxu1 %v1167_v0 }
  0xb4   : > { %v490_v36 = vpop.permute.xlu0 %489 }
  0xb5   : > { %1010 = vmatpush3.bf16.msra.mxu0 %v423_v24  ;;  %1030 = vmatpush3.bf16.msra.mxu1 %v490_v36  ;;  %v557_v40 = vpop.permute.xlu1 %556 }
  0xb6   : > { %1011 = vmatprep.subr.bf16.mxu0 %v1167_v0  ;;  %1031 = vmatprep.subr.bf16.mxu1 %v1167_v0 }
  0xb8   : > { %v492_v38 = vpop.permute.xlu0 %491 }
  0xb9   : > { %1012 = vmatpush3.bf16.msra.mxu0 %v425_v25  ;;  %1032 = vmatpush3.bf16.msra.mxu1 %v492_v38  ;;  %v559_v44 = vpop.permute.xlu1 %558 }
  0xba   : > { %1013 = vmatprep.subr.bf16.mxu0 %v1167_v0  ;;  %1033 = vmatprep.subr.bf16.mxu1 %v1167_v0 }
  0xbc   : > { %v494_v39 = vpop.permute.xlu0 %493 }
  0xbd   : > { %1014 = vmatpush3.bf16.msra.mxu0 %v427_v26  ;;  %1034 = vmatpush3.bf16.msra.mxu1 %v494_v39  ;;  %v561_v47 = vpop.permute.xlu1 %560 }
  0xbe   : > { %1015 = vmatprep.subr.bf16.mxu0 %v1167_v0  ;;  %1035 = vmatprep.subr.bf16.mxu1 %v1167_v0 }
  0xc0   : > { %v496_v41 = vpop.permute.xlu0 %495 }
  0xc1   : > { %1016 = vmatpush3.bf16.msra.mxu0 %v429_v28  ;;  %1036 = vmatpush3.bf16.msra.mxu1 %v496_v41  ;;  %v563_v49 = vpop.permute.xlu1 %562 }
  0xc2   : > { %1041 = vmatprep.subr.bf16.mxu0 %v1167_v0  ;;  %1061 = vmatprep.subr.bf16.mxu1 %v1167_v0 }
  0xc4   : > { %1018 = vmatmul.mubr.bf16.vlgmr.msra.gmra.mrb[4].mxu0 %v890_v42  ;;  %v616_v45 = vpop.permute.xlu0 %615  ;;  %1038 = vmatmul.mubr.bf16.vlgmr.msra.gmra.mrb[4].mxu1 %v891_v43 }
  0xc5   : > { %1042 = vmatpush3.bf16.msra.mxu0 %v549_v30  ;;  %1062 = vmatpush3.bf16.msra.mxu1 %v616_v45  ;;  %v683_v52 = vpop.permute.xlu1 %682 }
  0xc6   : > { %1043 = vmatprep.subr.bf16.mxu0 %v1167_v0  ;;  %1063 = vmatprep.subr.bf16.mxu1 %v1167_v0 }
  0xc7   : > { %1057 = vmatprep.mubr.msk.bf16.mxu0 %vm1170_vm0, %v1167_v0  ;;  %1077 = vmatprep.mubr.msk.bf16.mxu1 %vm1170_vm0, %v1167_v0 }
  0xc8   : > { %v618_v46 = vpop.permute.xlu0 %617 }
  0xc9   : > { %1044 = vmatpush3.bf16.msra.mxu0 %v551_v32  ;;  %1064 = vmatpush3.bf16.msra.mxu1 %v618_v46  ;;  %v685_v54 = vpop.permute.xlu1 %684 }
  0xca   : > { %1045 = vmatprep.subr.bf16.mxu0 %v1167_v0  ;;  %1065 = vmatprep.subr.bf16.mxu1 %v1167_v0 }
  0xcc   : > { %v620_v48 = vpop.permute.xlu0 %619 }
  0xcd   : > { %1046 = vmatpush3.bf16.msra.mxu0 %v553_v35  ;;  %1066 = vmatpush3.bf16.msra.mxu1 %v620_v48  ;;  %v687_v57 = vpop.permute.xlu1 %686 }
  0xce   : > { %1047 = vmatprep.subr.bf16.mxu0 %v1167_v0  ;;  %1067 = vmatprep.subr.bf16.mxu1 %v1167_v0 }
  0xd0   : > { %v622_v50 = vpop.permute.xlu0 %621 }
  0xd1   : > { %1048 = vmatpush3.bf16.msra.mxu0 %v555_v37  ;;  %1068 = vmatpush3.bf16.msra.mxu1 %v622_v50  ;;  %v689_v60 = vpop.permute.xlu1 %688 }
  0xd2   : > { %1049 = vmatprep.subr.bf16.mxu0 %v1167_v0  ;;  %1069 = vmatprep.subr.bf16.mxu1 %v1167_v0 }
  0xd4   : > { %v624_v51 = vpop.permute.xlu0 %623 }
  0xd5   : > { %1050 = vmatpush3.bf16.msra.mxu0 %v557_v40  ;;  %1070 = vmatpush3.bf16.msra.mxu1 %v624_v51  ;;  %v691_v61 = vpop.permute.xlu1 %690 }
  0xd6   : > { %1051 = vmatprep.subr.bf16.mxu0 %v1167_v0  ;;  %1071 = vmatprep.subr.bf16.mxu1 %v1167_v0 }
  0xd8   : > { %v626_v53 = vpop.permute.xlu0 %625 }
  0xd9   : > { %1052 = vmatpush3.bf16.msra.mxu0 %v559_v44  ;;  %1072 = vmatpush3.bf16.msra.mxu1 %v626_v53  ;;  %v693_v62 = vpop.permute.xlu1 %692 }
  0xda   : > { %1053 = vmatprep.subr.bf16.mxu0 %v1167_v0  ;;  %1073 = vmatprep.subr.bf16.mxu1 %v1167_v0 }
  0xdc   : > { %v628_v55 = vpop.permute.xlu0 %627 }
  0xdd   : > { %1054 = vmatpush3.bf16.msra.mxu0 %v561_v47  ;;  %1074 = vmatpush3.bf16.msra.mxu1 %v628_v55  ;;  %v695_v63 = vpop.permute.xlu1 %694 }
  0xde   : > { %1055 = vmatprep.subr.bf16.mxu0 %v1167_v0  ;;  %1075 = vmatprep.subr.bf16.mxu1 %v1167_v0 }
  0xe0   : > { %v630_v56 = vpop.permute.xlu0 %629 }
  0xe1   : > { %1056 = vmatpush3.bf16.msra.mxu0 %v563_v49  ;;  %1076 = vmatpush3.bf16.msra.mxu1 %v630_v56  ;;  %v697_v1 = vpop.permute.xlu1 %696 }
  0xe2   : > { %1081 = vmatprep.subr.bf16.mxu0 %v1167_v0 }
  0xe4   : > { %1058 = vmatmul.mubr.bf16.vlgmr.msra.gmra.mrb[8].mxu0 %v892_v58  ;;  %1078 = vmatmul.mubr.bf16.vlgmr.msra.gmra.mrb[8].mxu1 %v893_v59 }
  0xe5   : > { %1082 = vmatpush3.bf16.msra.mxu0 %v683_v52  ;;  %1097 = vmatprep.mubr.msk.bf16.mxu0 %vm1170_vm0, %v1167_v0 }
  0xe6   : > { %1083 = vmatprep.subr.bf16.mxu0 %v1167_v0 }
  0xe9   : > { %1084 = vmatpush3.bf16.msra.mxu0 %v685_v54 }
  0xea   : > { %1085 = vmatprep.subr.bf16.mxu0 %v1167_v0 }
  0xed   : > { %1086 = vmatpush3.bf16.msra.mxu0 %v687_v57 }
  0xee   : > { %1087 = vmatprep.subr.bf16.mxu0 %v1167_v0 }
  0xf1   : > { %1088 = vmatpush3.bf16.msra.mxu0 %v689_v60  ;;  %v751_v32 = vpop.permute.xlu0 %750 }
  0xf2   : > { %1089 = vmatprep.subr.bf16.mxu0 %v1167_v0 }
  0xf5   : > { %1090 = vmatpush3.bf16.msra.mxu0 %v691_v61 }
  0xf6   : > { %1091 = vmatprep.subr.bf16.mxu0 %v1167_v0 }
  0xf9   : > { %1092 = vmatpush3.bf16.msra.mxu0 %v693_v62 }
  0xfa   : > { %1093 = vmatprep.subr.bf16.mxu0 %v1167_v0 }
  0xfd   : > { %1094 = vmatpush3.bf16.msra.mxu0 %v695_v63 }
  0xfe   : > { %1095 = vmatprep.subr.bf16.mxu0 %v1167_v0 }
 0x101   : > { %1096 = vmatpush3.bf16.msra.mxu0 %v697_v1 }
 0x104   : > { %1098 = vmatmul.mubr.bf16.vlgmr.msra.gmra.mrb[12].mxu0 %v894_v2  ;;  %v406_v3 = vpop.f32.mrb[0].mxu1 }
 0x105   : > { %v999_v4 = vpop.f32.mrb[1].mxu1 }
 0x106   : > { %v409_v5 = vpop.f32.mrb[2].mxu1 }
 0x107   : > { %v1000_v6 = vpop.f32.mrb[3].mxu1 }
 0x177   : > { %v358_v7 = vpop.f32.mrb[0].mxu0 }
 0x178   : > { %v979_v8 = vpop.f32.mrb[1].mxu0  ;;  %v407_v9 = vadd.f32 %v406_v3, %v358_v7 }
 0x179   : > { %v361_v10 = vpop.f32.mrb[2].mxu0 }
 0x17a   : > { %v980_v11 = vpop.f32.mrb[3].mxu0 }
 0x197   : > { %v472_v12 = vpop.f32.mrb[4].mxu0  ;;  %v539_v13 = vpop.f32.mrb[4].mxu1 }
 0x198   : > { %v478_v14 = vadd.f32 %v472_v12, %v407_v9  ;;  %v1019_v15 = vpop.f32.mrb[5].mxu0  ;;  %v1039_v0 = vpop.f32.mrb[5].mxu1 }
 0x199   : > { %v475_v16 = vpop.f32.mrb[6].mxu0  ;;  %v542_v17 = vpop.f32.mrb[6].mxu1 }
 0x19a   : > { %v545_v18 = vadd.f32 %v539_v13, %v478_v14  ;;  %v1020_v19 = vpop.f32.mrb[7].mxu0  ;;  %v1040_v20 = vpop.f32.mrb[7].mxu1 }
 0x1b7   : > { %v606_v21 = vpop.f32.mrb[8].mxu0  ;;  %v673_v22 = vpop.f32.mrb[8].mxu1 }
 0x1b8   : > { %v612_v23 = vadd.f32 %v606_v21, %v545_v18  ;;  %v1059_v24 = vpop.f32.mrb[9].mxu0  ;;  %v1079_v25 = vpop.f32.mrb[9].mxu1 }
 0x1b9   : > { %v609_v26 = vpop.f32.mrb[10].mxu0  ;;  %v676_v27 = vpop.f32.mrb[10].mxu1 }
 0x1ba   : > { %v679_v28 = vadd.f32 %v673_v22, %v612_v23  ;;  %v1060_v29 = vpop.f32.mrb[11].mxu0  ;;  %v1080_v30 = vpop.f32.mrb[11].mxu1 }
 0x1d7   : > { %v740_v31 = vpop.f32.mrb[12].mxu0 }
 0x1d8   : > { %v746_v33 = vadd.f32 %v740_v31, %v679_v28  ;;  %v1099_v34 = vpop.f32.mrb[13].mxu0 }
 0x1d9   : > { %v743_v35 = vpop.f32.mrb[14].mxu0 }
 0x1da   : > { %v753_v36 = vadd.f32 %v751_v32, %v746_v33  ;;  %v1100_v37 = vpop.f32.mrb[15].mxu0 }
 0x1dc   : > { %vm754_vm1 = vcmp.ge.f32.partialorder %v753_v36, 0.0  ;;  %v755_v38 = vmul.f32 0.2, %v753_v36 }
 0x1de   : > { %v756_v39 = vsel %vm754_vm1, %v753_v36, %v755_v38 }
 0x1df   : > { %v757_v40 = vpack.c.bf16 %v756_v39, %v756_v39 }
 0x1e1   : > { %759 = vst.msk [vmem:[%s239_s22] sm:$0x3] %vm758_vm2, %v757_v40 }
 0x1e2 PF: > { %s13_s14 = sadd.s32 1, %s1165_s14   ;;  %s1394_s12 = smov %s1161_s13 }
 0x1e3   : > { %p10_p5 = scmp.ge.s32.totalorder %s13_s14, 4   ;;  %s1395_s13 = smov %s1397_s15 }
 0x1e5   :  { %12 = sbr.rel (!%p10_p5) target bundleno = 2 (0x2), region = 74 }

// kernel: disc_layer_forward.7
= control target key start
LH: loop header
LB: loop body
LE: loop exit
PB: predicated region body
PF: predicated region fallthrough
CT: control target
= control target key end

     0   :  { %s767_s12 = smov 0   ;;  %s769_s13 = smov 0   ;;  %s837_s0 = inlined_call_operand.vmem [shape: bf16[2,1,4,4,17], index: 0, kind: input, shape index: {}]   ;;  %s838_s1 = inlined_call_operand.vmem [shape: bf16[1,5,8,4], index: 1, kind: input, shape index: {}]   ;;  %s839_s2 = inlined_call_operand.vmem [shape: f32[1,8,1], index: 2, kind: input, shape index: {}]   ;;  %s840_s3 = inlined_call_operand.vmem [shape: bf16[2,1,8,16], index: 3, kind: output, shape index: {}]  }
   0x1   :  { %s771_s14 = smov 0  }
   0x2 LB: > { %s25_s15 = sadd.s32 1, %s736_s13  ;;  %p629_p0 = scmp.ge.s32.totalorder %s740_s14, 1  ;;  %s740_s14 = sphi %s771_s14, %s13_s14   ;;  %s736_s13 = sphi %s769_s13, %s842_s13   ;;  %s732_s12 = sphi %s767_s12, %s841_s12  }
   0x3   : > { %p27_p1 = scmp.ge.s32.totalorder %s25_s15, 2  ;;  %p176_p2 = scmp.lt.s32.totalorder %s740_s14, 3 }
   0x5   : > { %s844_s15 = smov (%p27_p1, %s25_s15), 0  ;;  %p177_p3 = pnand %p629_p0, %p176_p2 }
   0x6   : > { %p215_p4 = scmp.lt.s32.totalorder (!%p177_p3), %s732_s12, 1  ;;  %v449_v0 = vlaneseq (!%p177_p3)  ;;  %v742_v1 = vmov (!%p177_p3), 1983009808   ;;  %v743_v3 = vmov (!%p177_p3), 0.0   ;;  %vm744_vm0 = vmmov (!%p177_p3), 0   ;;  %s746_s24 = smov (!%p177_p3), 127  }
   0x7   : > { %180 = sbr.rel (%p177_p3) target bundleno = 358 (0x166), region = 32  ;;  %v447_v2 = vunpack.c.l.s4 (!%p177_p3), %v742_v1  ;;  %658 = vmatprep.subr.bf16.mxu0 (!%p177_p3), %v743_v3  ;;  %664 = vmatprep.subr.bf16.mxu1 (!%p177_p3), %v743_v3  ;;  %vm251_vm1 = vcmask (!%p177_p3), 1041408   ;;  %v745_v6 = vmov (!%p177_p3), 0   ;;  %v633_v15 = vld [vmem:[%s838_s1 + $0x4] sm:$0xf] (!%p177_p3)  ;;  %vm247_vm2 = vcmask (!%p177_p3), 31744  }
   0x8   : > { %v450_v4 = vshrl.u32 (!%p177_p3), %v449_v0, 7  ;;  %660 = vmatprep.mubr.msk.bf16.mxu0 (!%p177_p3), %vm744_vm0, %v743_v3  ;;  %666 = vmatprep.mubr.msk.bf16.mxu1 (!%p177_p3), %vm744_vm0, %v743_v3  ;;  %v241_v16 = vld [vmem:[%s838_s1] sm:$0xf] (!%p177_p3)  ;;  %v637_v20 = vld [vmem:[%s838_s1 + $0x8] sm:$0xf] (!%p177_p3)  ;;  %vm510_vm3 = vcmask (!%p177_p3), 125952  }
   0x9   : > { %v448_v5 = vunpack.c.0.s8 (!%p177_p3), %v447_v2  ;;  %717 = vset.pattern.permute.xlu0 (!%p177_p3), %v745_v6  ;;  %v502_v19 = vld [vmem:[%s839_s2] sm:$0xff] (!%p177_p3)  ;;  %v640_v21 = vld [vmem:[%s838_s1 + $0xc] sm:$0xf] (!%p177_p3)  ;;  %v643_v24 = vld [vmem:[%s838_s1 + $0x10] sm:$0xf] (!%p177_p3) }
   0xb   : > { %v451_v7 = vsub.s32 (!%p177_p3), %v448_v5, %v450_v4 }
   0xe   : > { %s846_s12 = smov (!%p215_p4, %s732_s12), 1 }
   0xf   : > { %s647_s16 = sshll.u32 %s846_s12, 3  ;;  %s632_s6 = sshll.u32 %s846_s12, 2 }
  0x10   : > { %s223_s19 = scalar_lea.vmem %s837_s0, %s647_s16  ;;  %s239_s9 = scalar_lea.vmem %s840_s3, %s632_s6 }
  0x11   : > { %v242_v8 = vld [vmem:[%s223_s19] sm:$0x3]  ;;  %v634_v9 = vld [vmem:[%s223_s19 + $0x2] sm:$0x3]  ;;  %v638_v10 = vld [vmem:[%s223_s19 + $0x4] sm:$0x3] }
  0x12   : > { %v452_v11 = vrot.slane %v242_v8, %v451_v7  ;;  %v253_v12 = vsel %vm251_vm1, %v634_v9, 0  ;;  %v299_v13 = vsel %vm251_vm1, %v242_v8, 0  ;;  %v641_v14 = vld [vmem:[%s223_s19 + $0x6] sm:$0x3]  ;;  %v349_v17 = vsel %vm251_vm1, %v638_v10, 0 }
  0x13   : > { %659 = vmatpush3.bf16.msra.mxu0 %v253_v12  ;;  %665 = vmatpush3.bf16.msra.mxu1 %v299_v13  ;;  %v400_v18 = vsel %vm251_vm1, %v641_v14, 0 }
  0x14   : > { %453 = vrot.lane.b32.xlu0 %v452_v11, %s746_s24  ;;  %670 = vmatprep.subr.bf16.mxu0 %v743_v3 }
  0x15   : > { %676 = vmatprep.subr.bf16.mxu1 %v743_v3 }
  0x16   : > { %661 = vmatmul.mubr.msk.bf16.vlgmr.msra.gmra.mrb[0].mxu0 %vm247_vm2, %v633_v15  ;;  %667 = vmatmul.mubr.msk.bf16.vlgmr.msra.gmra.mrb[0].mxu1 %vm247_vm2, %v241_v16 }
  0x17   : > { %671 = vmatpush3.bf16.msra.mxu0 %v349_v17  ;;  %672 = vmatprep.mubr.msk.bf16.mxu0 %vm744_vm0, %v743_v3 }
  0x18   : > { %677 = vmatpush3.bf16.msra.mxu1 %v400_v18  ;;  %678 = vmatprep.mubr.msk.bf16.mxu1 %vm744_vm0, %v743_v3 }
  0x19   : > { %682 = vmatprep.subr.bf16.mxu0 %v743_v3  ;;  %505 = vperm.xlu0 %717, %v502_v19  }
  0x1e   : > { %673 = vmatmul.mubr.msk.bf16.vlgmr.msra.gmra.mrb[4].mxu0 %vm247_vm2, %v637_v20  ;;  %679 = vmatmul.mubr.msk.bf16.vlgmr.msra.gmra.mrb[4].mxu1 %vm247_vm2, %v640_v21 }
  0x1f   : > { %684 = vmatprep.mubr.msk.bf16.mxu0 %vm744_vm0, %v743_v3 }
  0x86   : > { %v454_v22 = vpop.permute.xlu0 %453 }
  0x87   : > { %v459_v23 = vsel %vm251_vm1, %v454_v22, 0 }
  0x88   : > { %683 = vmatpush3.bf16.msra.mxu0 %v459_v23 }
  0x8b   : > { %685 = vmatmul.mubr.msk.bf16.vlgmr.msra.gmra.mrb[8].mxu0 %vm247_vm2, %v643_v24 }
  0x98   : > { %v506_v45 = vpop.permute.xlu0 %505 }
  0xe9   : > { %v289_v25 = vpop.f32.mrb[0].mxu0  ;;  %v335_v26 = vpop.f32.mrb[0].mxu1 }
  0xea   : > { %v662_v27 = vpop.f32.mrb[1].mxu0  ;;  %v336_v28 = vadd.f32 %v335_v26, %v289_v25  ;;  %v668_v29 = vpop.f32.mrb[1].mxu1 }
  0xeb   : > { %v292_v30 = vpop.f32.mrb[2].mxu0  ;;  %v338_v31 = vpop.f32.mrb[2].mxu1 }
  0xec   : > { %v663_v32 = vpop.f32.mrb[3].mxu0  ;;  %v669_v33 = vpop.f32.mrb[3].mxu1 }
  0xf1   : > { %v385_v34 = vpop.f32.mrb[4].mxu0  ;;  %v436_v35 = vpop.f32.mrb[4].mxu1 }
  0xf2   : > { %v391_v36 = vadd.f32 %v385_v34, %v336_v28  ;;  %v674_v37 = vpop.f32.mrb[5].mxu0  ;;  %v680_v38 = vpop.f32.mrb[5].mxu1 }
  0xf3   : > { %v388_v39 = vpop.f32.mrb[6].mxu0  ;;  %v439_v40 = vpop.f32.mrb[6].mxu1 }
  0xf4   : > { %v442_v41 = vadd.f32 %v436_v35, %v391_v36  ;;  %v675_v42 = vpop.f32.mrb[7].mxu0  ;;  %v681_v43 = vpop.f32.mrb[7].mxu1 }
 0x15e   : > { %v495_v44 = vpop.f32.mrb[8].mxu0 }
 0x15f   : > { %v501_v46 = vadd.f32 %v495_v44, %v442_v41  ;;  %v686_v47 = vpop.f32.mrb[9].mxu0 }
 0x160   : > { %v498_v48 = vpop.f32.mrb[10].mxu0 }
 0x161   : > { %v508_v49 = vadd.f32 %v506_v45, %v501_v46  ;;  %v687_v50 = vpop.f32.mrb[11].mxu0 }
 0x163   : > { %v509_v51 = vpack.c.bf16 %v508_v49, %v508_v49 }
 0x165   : > { %511 = vst.msk [vmem:[%s239_s9] sm:$0xf] %vm510_vm3, %v509_v51 }
 0x166 PF: > { %s13_s14 = sadd.s32 1, %s740_s14   ;;  %s841_s12 = smov %s736_s13 }
 0x167   : > { %p10_p5 = scmp.ge.s32.totalorder %s13_s14, 4   ;;  %s842_s13 = smov %s844_s15 }
 0x169   :  { %12 = sbr.rel (!%p10_p5) target bundleno = 2 (0x2), region = 75 }

// kernel: disc_layer_forward.8
= control target key start
LH: loop header
LB: loop body
LE: loop exit
PB: predicated region body
PF: predicated region fallthrough
CT: control target
= control target key end

     0   :  { %s805_s12 = smov 0   ;;  %s807_s13 = smov 0   ;;  %s894_s0 = inlined_call_operand.vmem [shape: bf16[2,2,4,4,6], index: 0, kind: input, shape index: {}]   ;;  %s895_s1 = inlined_call_operand.vmem [shape: bf16[2,5,8,4], index: 1, kind: input, shape index: {}]   ;;  %s896_s2 = inlined_call_operand.vmem [shape: f32[2,8,1], index: 2, kind: input, shape index: {}]   ;;  %s897_s3 = inlined_call_operand.vmem [shape: bf16[2,2,8,5], index: 3, kind: output, shape index: {}]  }
   0x1   :  { %s809_s14 = smov 0   ;;  %s811_s15 = smov 0  }
   0x2   :  { %s813_s16 = smov 0  }
   0x3 LB: > { %s22_s17 = sadd.s32 1, %s770_s14  ;;  %s25_s18 = sadd.s32 1, %s774_s15  ;;  %s778_s16 = sphi %s813_s16, %s13_s16   ;;  %s774_s15 = sphi %s811_s15, %s901_s15   ;;  %s770_s14 = sphi %s809_s14, %s900_s14   ;;  %s766_s13 = sphi %s807_s13, %s899_s13   ;;  %s762_s12 = sphi %s805_s12, %s898_s12  }
   0x4   : > { %p23_p0 = scmp.ge.s32.totalorder %s22_s17, 2  ;;  %p631_p1 = scmp.ge.s32.totalorder %s778_s16, 1 }
   0x5   : > { %p176_p2 = scmp.lt.s32.totalorder %s778_s16, 5 }
   0x6   : > { %s903_s17 = smov (%p23_p0, %s22_s17), 0  ;;  %s905_s18 = smov (!%p23_p0, %s25_s18), %s774_s15 }
   0x7   : > { %p177_p3 = pnand %p631_p1, %p176_p2  ;;  %p27_p4 = scmp.ge.s32.totalorder %s905_s18, 2 }
   0x8   : > { %p216_p5 = scmp.lt.s32.totalorder (!%p177_p3), %s766_s13, 1  ;;  %p218_p6 = scmp.lt.s32.totalorder (!%p177_p3), %s762_s12, 1  ;;  %v451_v0 = vlaneseq (!%p177_p3)  ;;  %v780_v1 = vmov (!%p177_p3), 1983009808   ;;  %v781_v3 = vmov (!%p177_p3), 0.0   ;;  %vm782_vm0 = vmmov (!%p177_p3), 0  }
   0x9   : > { %s907_s18 = smov (%p27_p4, %s905_s18), 0  ;;  %180 = sbr.rel (%p177_p3) target bundleno = 362 (0x16a), region = 32 }
   0xa   : > { %v449_v2 = vunpack.c.l.s4 (!%p177_p3), %v780_v1  ;;  %663 = vmatprep.subr.bf16.mxu0 (!%p177_p3), %v781_v3  ;;  %669 = vmatprep.subr.bf16.mxu1 (!%p177_p3), %v781_v3  ;;  %v452_v4 = vshrl.u32 (!%p177_p3), %v451_v0, 7  ;;  %v783_v6 = vmov (!%p177_p3), 0   ;;  %vm253_vm1 = vcmask (!%p177_p3), 1041408   ;;  %s784_s7 = smov (!%p177_p3), 127  }
   0xb   : > { %665 = vmatprep.mubr.msk.bf16.mxu0 (!%p177_p3), %vm782_vm0, %v781_v3  ;;  %671 = vmatprep.mubr.msk.bf16.mxu1 (!%p177_p3), %vm782_vm0, %v781_v3  ;;  %vm249_vm2 = vcmask (!%p177_p3), 31744   ;;  %vm512_vm3 = vcmask (!%p177_p3), 35840  }
   0xc   : > { %v450_v5 = vunpack.c.0.s8 (!%p177_p3), %v449_v2  ;;  %739 = vset.pattern.permute.xlu0 (!%p177_p3), %v783_v6 }
   0xe   : > { %v453_v7 = vsub.s32 (!%p177_p3), %v450_v5, %v452_v4 }
  0x10   : > { %s909_s13 = smov (!%p216_p5, %s766_s13), 1  ;;  %s911_s12 = smov (!%p218_p6, %s762_s12), 1 }
  0x11   : > { %s633_s19 = sshll.u32 %s909_s13, 3  ;;  %s632_s20 = sshll.u32 %s911_s12, 2 }
  0x12   : > { %s693_s21 = smul.u32 20, %s911_s12  ;;  %s222_s22 = sadd.s32 %s633_s19, %s632_s20 }
  0x13   : > { %s634_s23 = sshll.u32 %s222_s22, 1  ;;  %s636_s24 = sshll.u32 %s911_s12, 3 }
  0x14   : > { %s224_s27 = scalar_lea.vmem %s894_s0, %s634_s23  ;;  %s851_s30 = scalar_lea.vmem %s895_s1, %s693_s21 }
  0x15   : > { %v244_v8 = vld [vmem:[%s224_s27] sm:$0x3]  ;;  %v640_v9 = vld [vmem:[%s224_s27 + $0x2] sm:$0x3]  ;;  %v644_v10 = vld [vmem:[%s224_s27 + $0x4] sm:$0x3]  ;;  %s233_s6 = scalar_lea.vmem %s896_s2, %s636_s24 }
  0x16   : > { %v454_v11 = vrot.slane %v244_v8, %v453_v7  ;;  %v255_v12 = vsel %vm253_vm1, %v640_v9, 0  ;;  %v301_v13 = vsel %vm253_vm1, %v244_v8, 0  ;;  %v647_v14 = vld [vmem:[%s224_s27 + $0x6] sm:$0x3]  ;;  %v243_v16 = vld [vmem:[%s851_s30] sm:$0xf] }
  0x17   : > { %664 = vmatpush3.bf16.msra.mxu0 %v255_v12  ;;  %670 = vmatpush3.bf16.msra.mxu1 %v301_v13  ;;  %v639_v15 = vld [vmem:[%s851_s30 + $0x4] sm:$0xf]  ;;  %v351_v17 = vsel %vm253_vm1, %v644_v10, 0  ;;  %v402_v18 = vsel %vm253_vm1, %v647_v14, 0  ;;  %v643_v20 = vld [vmem:[%s851_s30 + $0x8] sm:$0xf] }
  0x18   : > { %455 = vrot.lane.b32.xlu0 %v454_v11, %s784_s7  ;;  %675 = vmatprep.subr.bf16.mxu0 %v781_v3  ;;  %v504_v19 = vld [vmem:[%s233_s6] sm:$0xff]  ;;  %v646_v21 = vld [vmem:[%s851_s30 + $0xc] sm:$0xf]  ;;  %v649_v24 = vld [vmem:[%s851_s30 + $0x10] sm:$0xf]  ;;  %s637_s8 = sshll.u32 %s909_s13, 1 }
  0x19   : > { %681 = vmatprep.subr.bf16.mxu1 %v781_v3  ;;  %s239_s9 = sadd.s32 %s637_s8, %s911_s12 }
  0x1a   : > { %666 = vmatmul.mubr.msk.bf16.vlgmr.msra.gmra.mrb[0].mxu0 %vm249_vm2, %v639_v15  ;;  %672 = vmatmul.mubr.msk.bf16.vlgmr.msra.gmra.mrb[0].mxu1 %vm249_vm2, %v243_v16  ;;  %s638_s10 = sshll.u32 %s239_s9, 2 }
  0x1b   : > { %676 = vmatpush3.bf16.msra.mxu0 %v351_v17  ;;  %677 = vmatprep.mubr.msk.bf16.mxu0 %vm782_vm0, %v781_v3  ;;  %s241_s20 = scalar_lea.vmem %s897_s3, %s638_s10 }
  0x1c   : > { %682 = vmatpush3.bf16.msra.mxu1 %v402_v18  ;;  %683 = vmatprep.mubr.msk.bf16.mxu1 %vm782_vm0, %v781_v3 }
  0x1d   : > { %687 = vmatprep.subr.bf16.mxu0 %v781_v3  ;;  %507 = vperm.xlu0 %739, %v504_v19  }
  0x22   : > { %678 = vmatmul.mubr.msk.bf16.vlgmr.msra.gmra.mrb[4].mxu0 %vm249_vm2, %v643_v20  ;;  %684 = vmatmul.mubr.msk.bf16.vlgmr.msra.gmra.mrb[4].mxu1 %vm249_vm2, %v646_v21 }
  0x23   : > { %689 = vmatprep.mubr.msk.bf16.mxu0 %vm782_vm0, %v781_v3 }
  0x8a   : > { %v456_v22 = vpop.permute.xlu0 %455 }
  0x8b   : > { %v461_v23 = vsel %vm253_vm1, %v456_v22, 0 }
  0x8c   : > { %688 = vmatpush3.bf16.msra.mxu0 %v461_v23 }
  0x8f   : > { %690 = vmatmul.mubr.msk.bf16.vlgmr.msra.gmra.mrb[8].mxu0 %vm249_vm2, %v649_v24 }
  0x9c   : > { %v508_v45 = vpop.permute.xlu0 %507 }
  0xed   : > { %v291_v25 = vpop.f32.mrb[0].mxu0  ;;  %v337_v26 = vpop.f32.mrb[0].mxu1 }
  0xee   : > { %v667_v27 = vpop.f32.mrb[1].mxu0  ;;  %v338_v28 = vadd.f32 %v337_v26, %v291_v25  ;;  %v673_v29 = vpop.f32.mrb[1].mxu1 }
  0xef   : > { %v294_v30 = vpop.f32.mrb[2].mxu0  ;;  %v340_v31 = vpop.f32.mrb[2].mxu1 }
  0xf0   : > { %v668_v32 = vpop.f32.mrb[3].mxu0  ;;  %v674_v33 = vpop.f32.mrb[3].mxu1 }
  0xf5   : > { %v387_v34 = vpop.f32.mrb[4].mxu0  ;;  %v438_v35 = vpop.f32.mrb[4].mxu1 }
  0xf6   : > { %v393_v36 = vadd.f32 %v387_v34, %v338_v28  ;;  %v679_v37 = vpop.f32.mrb[5].mxu0  ;;  %v685_v38 = vpop.f32.mrb[5].mxu1 }
  0xf7   : > { %v390_v39 = vpop.f32.mrb[6].mxu0  ;;  %v441_v40 = vpop.f32.mrb[6].mxu1 }
  0xf8   : > { %v444_v41 = vadd.f32 %v438_v35, %v393_v36  ;;  %v680_v42 = vpop.f32.mrb[7].mxu0  ;;  %v686_v43 = vpop.f32.mrb[7].mxu1 }
 0x162   : > { %v497_v44 = vpop.f32.mrb[8].mxu0 }
 0x163   : > { %v503_v46 = vadd.f32 %v497_v44, %v444_v41  ;;  %v691_v47 = vpop.f32.mrb[9].mxu0 }
 0x164   : > { %v500_v48 = vpop.f32.mrb[10].mxu0 }
 0x165   : > { %v510_v49 = vadd.f32 %v508_v45, %v503_v46  ;;  %v692_v50 = vpop.f32.mrb[11].mxu0 }
 0x167   : > { %v511_v51 = vpack.c.bf16 %v510_v49, %v510_v49 }
 0x169   : > { %513 = vst.msk [vmem:[%s241_s20] sm:$0xf] %vm512_vm3, %v511_v51 }
 0x16a PF: > { %s13_s16 = sadd.s32 1, %s778_s16   ;;  %s898_s12 = smov %s770_s14 }
 0x16b   : > { %p10_p7 = scmp.ge.s32.totalorder %s13_s16, 6   ;;  %s899_s13 = smov %s774_s15 }
 0x16c   : > { %s900_s14 = smov %s903_s17  ;;  %s901_s15 = smov %s907_s18 }
 0x16d   :  { %12 = sbr.rel (!%p10_p7) target bundleno = 3 (0x3), region = 75 }

// kernel: disc_layer_forward.9
= control target key start
LH: loop header
LB: loop body
LE: loop exit
PB: predicated region body
PF: predicated region fallthrough
CT: control target
= control target key end

     0   :  { %s805_s12 = smov 0   ;;  %s807_s13 = smov 0   ;;  %s894_s0 = inlined_call_operand.vmem [shape: bf16[2,4,4,4,4], index: 0, kind: input, shape index: {}]   ;;  %s895_s1 = inlined_call_operand.vmem [shape: bf16[4,5,8,4], index: 1, kind: input, shape index: {}]   ;;  %s896_s2 = inlined_call_operand.vmem [shape: f32[4,8,1], index: 2, kind: input, shape index: {}]   ;;  %s897_s3 = inlined_call_operand.vmem [shape: bf16[2,4,8,3], index: 3, kind: output, shape index: {}]  }
   0x1   :  { %s809_s14 = smov 0   ;;  %s811_s15 = smov 0  }
   0x2   :  { %s813_s16 = smov 0  }
   0x3 LB: > { %s22_s17 = sadd.s32 1, %s770_s14  ;;  %s25_s18 = sadd.s32 1, %s774_s15  ;;  %s778_s16 = sphi %s813_s16, %s13_s16   ;;  %s774_s15 = sphi %s811_s15, %s901_s15   ;;  %s770_s14 = sphi %s809_s14, %s900_s14   ;;  %s766_s13 = sphi %s807_s13, %s899_s13   ;;  %s762_s12 = sphi %s805_s12, %s898_s12  }
   0x4   : > { %p23_p0 = scmp.ge.s32.totalorder %s22_s17, 4  ;;  %p631_p1 = scmp.ge.s32.totalorder %s778_s16, 1 }
   0x5   : > { %p176_p2 = scmp.lt.s32.totalorder %s778_s16, 9 }
   0x6   : > { %s903_s17 = smov (%p23_p0, %s22_s17), 0  ;;  %s905_s18 = smov (!%p23_p0, %s25_s18), %s774_s15 }
   0x7   : > { %p177_p3 = pnand %p631_p1, %p176_p2  ;;  %p27_p4 = scmp.ge.s32.totalorder %s905_s18, 2 }
   0x8   : > { %p216_p5 = scmp.lt.s32.totalorder (!%p177_p3), %s766_s13, 1  ;;  %p218_p6 = scmp.lt.s32.totalorder (!%p177_p3), %s762_s12, 3  ;;  %v451_v0 = vlaneseq (!%p177_p3)  ;;  %v780_v1 = vmov (!%p177_p3), 1983009808   ;;  %v781_v3 = vmov (!%p177_p3), 0.0   ;;  %vm782_vm0 = vmmov (!%p177_p3), 0  }
   0x9   : > { %s907_s18 = smov (%p27_p4, %s905_s18), 0  ;;  %180 = sbr.rel (%p177_p3) target bundleno = 362 (0x16a), region = 32 }
   0xa   : > { %v449_v2 = vunpack.c.l.s4 (!%p177_p3), %v780_v1  ;;  %663 = vmatprep.subr.bf16.mxu0 (!%p177_p3), %v781_v3  ;;  %669 = vmatprep.subr.bf16.mxu1 (!%p177_p3), %v781_v3  ;;  %v452_v4 = vshrl.u32 (!%p177_p3), %v451_v0, 7  ;;  %v783_v6 = vmov (!%p177_p3), 0   ;;  %vm253_vm1 = vcmask (!%p177_p3), 1041408   ;;  %s784_s7 = smov (!%p177_p3), 127  }
   0xb   : > { %665 = vmatprep.mubr.msk.bf16.mxu0 (!%p177_p3), %vm782_vm0, %v781_v3  ;;  %671 = vmatprep.mubr.msk.bf16.mxu1 (!%p177_p3), %vm782_vm0, %v781_v3  ;;  %vm249_vm2 = vcmask (!%p177_p3), 31744   ;;  %vm512_vm3 = vcmask (!%p177_p3), 19456  }
   0xc   : > { %v450_v5 = vunpack.c.0.s8 (!%p177_p3), %v449_v2  ;;  %739 = vset.pattern.permute.xlu0 (!%p177_p3), %v783_v6 }
   0xe   : > { %v453_v7 = vsub.s32 (!%p177_p3), %v450_v5, %v452_v4 }
  0x10   : > { %s909_s13 = smov (!%p216_p5, %s766_s13), 1  ;;  %s911_s12 = smov (!%p218_p6, %s762_s12), 3 }
  0x11   : > { %s633_s19 = sshll.u32 %s909_s13, 4  ;;  %s632_s20 = sshll.u32 %s911_s12, 2 }
  0x12   : > { %s693_s21 = smul.u32 20, %s911_s12  ;;  %s222_s22 = sadd.s32 %s633_s19, %s632_s20 }
  0x13   : > { %s634_s23 = sshll.u32 %s222_s22, 1  ;;  %s636_s24 = sshll.u32 %s911_s12, 3 }
  0x14   : > { %s224_s27 = scalar_lea.vmem %s894_s0, %s634_s23  ;;  %s851_s30 = scalar_lea.vmem %s895_s1, %s693_s21 }
  0x15   : > { %v244_v8 = vld [vmem:[%s224_s27] sm:$0x3]  ;;  %v640_v9 = vld [vmem:[%s224_s27 + $0x2] sm:$0x3]  ;;  %v644_v10 = vld [vmem:[%s224_s27 + $0x4] sm:$0x3]  ;;  %s233_s6 = scalar_lea.vmem %s896_s2, %s636_s24 }
  0x16   : > { %v454_v11 = vrot.slane %v244_v8, %v453_v7  ;;  %v255_v12 = vsel %vm253_vm1, %v640_v9, 0  ;;  %v301_v13 = vsel %vm253_vm1, %v244_v8, 0  ;;  %v647_v14 = vld [vmem:[%s224_s27 + $0x6] sm:$0x3]  ;;  %v243_v16 = vld [vmem:[%s851_s30] sm:$0xf] }
  0x17   : > { %664 = vmatpush3.bf16.msra.mxu0 %v255_v12  ;;  %670 = vmatpush3.bf16.msra.mxu1 %v301_v13  ;;  %v639_v15 = vld [vmem:[%s851_s30 + $0x4] sm:$0xf]  ;;  %v351_v17 = vsel %vm253_vm1, %v644_v10, 0  ;;  %v402_v18 = vsel %vm253_vm1, %v647_v14, 0  ;;  %v643_v20 = vld [vmem:[%s851_s30 + $0x8] sm:$0xf] }
  0x18   : > { %455 = vrot.lane.b32.xlu0 %v454_v11, %s784_s7  ;;  %675 = vmatprep.subr.bf16.mxu0 %v781_v3  ;;  %v504_v19 = vld [vmem:[%s233_s6] sm:$0xff]  ;;  %v646_v21 = vld [vmem:[%s851_s30 + $0xc] sm:$0xf]  ;;  %v649_v24 = vld [vmem:[%s851_s30 + $0x10] sm:$0xf]  ;;  %s637_s8 = sshll.u32 %s909_s13, 2 }
  0x19   : > { %681 = vmatprep.subr.bf16.mxu1 %v781_v3  ;;  %s239_s9 = sadd.s32 %s637_s8, %s911_s12 }
  0x1a   : > { %666 = vmatmul.mubr.msk.bf16.vlgmr.msra.gmra.mrb[0].mxu0 %vm249_vm2, %v639_v15  ;;  %672 = vmatmul.mubr.msk.bf16.vlgmr.msra.gmra.mrb[0].mxu1 %vm249_vm2, %v243_v16  ;;  %s638_s10 = sshll.u32 %s239_s9, 2 }
  0x1b   : > { %676 = vmatpush3.bf16.msra.mxu0 %v351_v17  ;;  %677 = vmatprep.mubr.msk.bf16.mxu0 %vm782_vm0, %v781_v3  ;;  %s241_s20 = scalar_lea.vmem %s897_s3, %s638_s10 }
  0x1c   : > { %682 = vmatpush3.bf16.msra.mxu1 %v402_v18  ;;  %683 = vmatprep.mubr.msk.bf16.mxu1 %vm782_vm0, %v781_v3 }
  0x1d   : > { %687 = vmatprep.subr.bf16.mxu0 %v781_v3  ;;  %507 = vperm.xlu0 %739, %v504_v19  }
  0x22   : > { %678 = vmatmul.mubr.msk.bf16.vlgmr.msra.gmra.mrb[4].mxu0 %vm249_vm2, %v643_v20  ;;  %684 = vmatmul.mubr.msk.bf16.vlgmr.msra.gmra.mrb[4].mxu1 %vm249_vm2, %v646_v21 }
  0x23   : > { %689 = vmatprep.mubr.msk.bf16.mxu0 %vm782_vm0, %v781_v3 }
  0x8a   : > { %v456_v22 = vpop.permute.xlu0 %455 }
  0x8b   : > { %v461_v23 = vsel %vm253_vm1, %v456_v22, 0 }
  0x8c   : > { %688 = vmatpush3.bf16.msra.mxu0 %v461_v23 }
  0x8f   : > { %690 = vmatmul.mubr.msk.bf16.vlgmr.msra.gmra.mrb[8].mxu0 %vm249_vm2, %v649_v24 }
  0x9c   : > { %v508_v45 = vpop.permute.xlu0 %507 }
  0xed   : > { %v291_v25 = vpop.f32.mrb[0].mxu0  ;;  %v337_v26 = vpop.f32.mrb[0].mxu1 }
  0xee   : > { %v667_v27 = vpop.f32.mrb[1].mxu0  ;;  %v338_v28 = vadd.f32 %v337_v26, %v291_v25  ;;  %v673_v29 = vpop.f32.mrb[1].mxu1 }
  0xef   : > { %v294_v30 = vpop.f32.mrb[2].mxu0  ;;  %v340_v31 = vpop.f32.mrb[2].mxu1 }
  0xf0   : > { %v668_v32 = vpop.f32.mrb[3].mxu0  ;;  %v674_v33 = vpop.f32.mrb[3].mxu1 }
  0xf5   : > { %v387_v34 = vpop.f32.mrb[4].mxu0  ;;  %v438_v35 = vpop.f32.mrb[4].mxu1 }
  0xf6   : > { %v393_v36 = vadd.f32 %v387_v34, %v338_v28  ;;  %v679_v37 = vpop.f32.mrb[5].mxu0  ;;  %v685_v38 = vpop.f32.mrb[5].mxu1 }
  0xf7   : > { %v390_v39 = vpop.f32.mrb[6].mxu0  ;;  %v441_v40 = vpop.f32.mrb[6].mxu1 }
  0xf8   : > { %v444_v41 = vadd.f32 %v438_v35, %v393_v36  ;;  %v680_v42 = vpop.f32.mrb[7].mxu0  ;;  %v686_v43 = vpop.f32.mrb[7].mxu1 }
 0x162   : > { %v497_v44 = vpop.f32.mrb[8].mxu0 }
 0x163   : > { %v503_v46 = vadd.f32 %v497_v44, %v444_v41  ;;  %v691_v47 = vpop.f32.mrb[9].mxu0 }
 0x164   : > { %v500_v48 = vpop.f32.mrb[10].mxu0 }
 0x165   : > { %v510_v49 = vadd.f32 %v508_v45, %v503_v46  ;;  %v692_v50 = vpop.f32.mrb[11].mxu0 }
 0x167   : > { %v511_v51 = vpack.c.bf16 %v510_v49, %v510_v49 }
 0x169   : > { %513 = vst.msk [vmem:[%s241_s20] sm:$0xf] %vm512_vm3, %v511_v51 }
 0x16a PF: > { %s13_s16 = sadd.s32 1, %s778_s16   ;;  %s898_s12 = smov %s770_s14 }
 0x16b   : > { %p10_p7 = scmp.ge.s32.totalorder %s13_s16, 10   ;;  %s899_s13 = smov %s774_s15 }
 0x16c   : > { %s900_s14 = smov %s903_s17  ;;  %s901_s15 = smov %s907_s18 }
 0x16d   :  { %12 = sbr.rel (!%p10_p7) target bundleno = 3 (0x3), region = 75 }

// kernel: disc_layer_forward.10
= control target key start
LH: loop header
LB: loop body
LE: loop exit
PB: predicated region body
PF: predicated region fallthrough
CT: control target
= control target key end

     0   :  { %s805_s12 = smov 0   ;;  %s807_s13 = smov 0   ;;  %s894_s0 = inlined_call_operand.vmem [shape: bf16[2,8,4,4,3], index: 0, kind: input, shape index: {}]   ;;  %s895_s1 = inlined_call_operand.vmem [shape: bf16[8,5,8,4], index: 1, kind: input, shape index: {}]   ;;  %s896_s2 = inlined_call_operand.vmem [shape: f32[8,8,1], index: 2, kind: input, shape index: {}]   ;;  %s897_s3 = inlined_call_operand.vmem [shape: bf16[2,8,8,2], index: 3, kind: output, shape index: {}]  }
   0x1   :  { %s809_s14 = smov 0   ;;  %s811_s15 = smov 0  }
   0x2   :  { %s813_s16 = smov 0  }
   0x3 LB: > { %s22_s17 = sadd.s32 1, %s770_s14  ;;  %s25_s18 = sadd.s32 1, %s774_s15  ;;  %s778_s16 = sphi %s813_s16, %s13_s16   ;;  %s774_s15 = sphi %s811_s15, %s901_s15   ;;  %s770_s14 = sphi %s809_s14, %s900_s14   ;;  %s766_s13 = sphi %s807_s13, %s899_s13   ;;  %s762_s12 = sphi %s805_s12, %s898_s12  }
   0x4   : > { %p23_p0 = scmp.ge.s32.totalorder %s22_s17, 8  ;;  %p631_p1 = scmp.ge.s32.totalorder %s778_s16, 1 }
   0x5   : > { %p176_p2 = scmp.lt.s32.totalorder %s778_s16, 17 }
   0x6   : > { %s903_s17 = smov (%p23_p0, %s22_s17), 0  ;;  %s905_s18 = smov (!%p23_p0, %s25_s18), %s774_s15 }
   0x7   : > { %p177_p3 = pnand %p631_p1, %p176_p2  ;;  %p27_p4 = scmp.ge.s32.totalorder %s905_s18, 2 }
   0x8   : > { %p216_p5 = scmp.lt.s32.totalorder (!%p177_p3), %s766_s13, 1  ;;  %p218_p6 = scmp.lt.s32.totalorder (!%p177_p3), %s762_s12, 7  ;;  %v451_v0 = vlaneseq (!%p177_p3)  ;;  %v780_v1 = vmov (!%p177_p3), 1983009808   ;;  %v781_v3 = vmov (!%p177_p3), 0.0   ;;  %vm782_vm0 = vmmov (!%p177_p3), 0  }
   0x9   : > { %s907_s18 = smov (%p27_p4, %s905_s18), 0  ;;  %180 = sbr.rel (%p177_p3) target bundleno = 362 (0x16a), region = 32 }
   0xa   : > { %v449_v2 = vunpack.c.l.s4 (!%p177_p3), %v780_v1  ;;  %663 = vmatprep.subr.bf16.mxu0 (!%p177_p3), %v781_v3  ;;  %669 = vmatprep.subr.bf16.mxu1 (!%p177_p3), %v781_v3  ;;  %v452_v4 = vshrl.u32 (!%p177_p3), %v451_v0, 7  ;;  %v783_v6 = vmov (!%p177_p3), 0   ;;  %vm253_vm1 = vcmask (!%p177_p3), 1041408   ;;  %s784_s7 = smov (!%p177_p3), 127  }
   0xb   : > { %665 = vmatprep.mubr.msk.bf16.mxu0 (!%p177_p3), %vm782_vm0, %v781_v3  ;;  %671 = vmatprep.mubr.msk.bf16.mxu1 (!%p177_p3), %vm782_vm0, %v781_v3  ;;  %vm249_vm2 = vcmask (!%p177_p3), 31744   ;;  %vm512_vm3 = vcmask (!%p177_p3), 11264  }
   0xc   : > { %v450_v5 = vunpack.c.0.s8 (!%p177_p3), %v449_v2  ;;  %739 = vset.pattern.permute.xlu0 (!%p177_p3), %v783_v6 }
   0xe   : > { %v453_v7 = vsub.s32 (!%p177_p3), %v450_v5, %v452_v4 }
  0x10   : > { %s909_s13 = smov (!%p216_p5, %s766_s13), 1  ;;  %s911_s12 = smov (!%p218_p6, %s762_s12), 7 }
  0x11   : > { %s633_s19 = sshll.u32 %s909_s13, 5  ;;  %s632_s20 = sshll.u32 %s911_s12, 2 }
  0x12   : > { %s693_s21 = smul.u32 20, %s911_s12  ;;  %s222_s22 = sadd.s32 %s633_s19, %s632_s20 }
  0x13   : > { %s634_s23 = sshll.u32 %s222_s22, 1  ;;  %s636_s24 = sshll.u32 %s911_s12, 3 }
  0x14   : > { %s224_s27 = scalar_lea.vmem %s894_s0, %s634_s23  ;;  %s851_s30 = scalar_lea.vmem %s895_s1, %s693_s21 }
  0x15   : > { %v244_v8 = vld [vmem:[%s224_s27] sm:$0x3]  ;;  %v640_v9 = vld [vmem:[%s224_s27 + $0x2] sm:$0x3]  ;;  %v644_v10 = vld [vmem:[%s224_s27 + $0x4] sm:$0x3]  ;;  %s233_s6 = scalar_lea.vmem %s896_s2, %s636_s24 }
  0x16   : > { %v454_v11 = vrot.slane %v244_v8, %v453_v7  ;;  %v255_v12 = vsel %vm253_vm1, %v640_v9, 0  ;;  %v301_v13 = vsel %vm253_vm1, %v244_v8, 0  ;;  %v647_v14 = vld [vmem:[%s224_s27 + $0x6] sm:$0x3]  ;;  %v243_v16 = vld [vmem:[%s851_s30] sm:$0xf] }
  0x17   : > { %664 = vmatpush3.bf16.msra.mxu0 %v255_v12  ;;  %670 = vmatpush3.bf16.msra.mxu1 %v301_v13  ;;  %v639_v15 = vld [vmem:[%s851_s30 + $0x4] sm:$0xf]  ;;  %v351_v17 = vsel %vm253_vm1, %v644_v10, 0  ;;  %v402_v18 = vsel %vm253_vm1, %v647_v14, 0  ;;  %v643_v20 = vld [vmem:[%s851_s30 + $0x8] sm:$0xf] }
  0x18   : > { %455 = vrot.lane.b32.xlu0 %v454_v11, %s784_s7  ;;  %675 = vmatprep.subr.bf16.mxu0 %v781_v3  ;;  %v504_v19 = vld [vmem:[%s233_s6] sm:$0xff]  ;;  %v646_v21 = vld [vmem:[%s851_s30 + $0xc] sm:$0xf]  ;;  %v649_v24 = vld [vmem:[%s851_s30 + $0x10] sm:$0xf]  ;;  %s637_s8 = sshll.u32 %s909_s13, 3 }
  0x19   : > { %681 = vmatprep.subr.bf16.mxu1 %v781_v3  ;;  %s239_s9 = sadd.s32 %s637_s8, %s911_s12 }
  0x1a   : > { %666 = vmatmul.mubr.msk.bf16.vlgmr.msra.gmra.mrb[0].mxu0 %vm249_vm2, %v639_v15  ;;  %672 = vmatmul.mubr.msk.bf16.vlgmr.msra.gmra.mrb[0].mxu1 %vm249_vm2, %v243_v16  ;;  %s638_s10 = sshll.u32 %s239_s9, 2 }
  0x1b   : > { %676 = vmatpush3.bf16.msra.mxu0 %v351_v17  ;;  %677 = vmatprep.mubr.msk.bf16.mxu0 %vm782_vm0, %v781_v3  ;;  %s241_s20 = scalar_lea.vmem %s897_s3, %s638_s10 }
  0x1c   : > { %682 = vmatpush3.bf16.msra.mxu1 %v402_v18  ;;  %683 = vmatprep.mubr.msk.bf16.mxu1 %vm782_vm0, %v781_v3 }
  0x1d   : > { %687 = vmatprep.subr.bf16.mxu0 %v781_v3  ;;  %507 = vperm.xlu0 %739, %v504_v19  }
  0x22   : > { %678 = vmatmul.mubr.msk.bf16.vlgmr.msra.gmra.mrb[4].mxu0 %vm249_vm2, %v643_v20  ;;  %684 = vmatmul.mubr.msk.bf16.vlgmr.msra.gmra.mrb[4].mxu1 %vm249_vm2, %v646_v21 }
  0x23   : > { %689 = vmatprep.mubr.msk.bf16.mxu0 %vm782_vm0, %v781_v3 }
  0x8a   : > { %v456_v22 = vpop.permute.xlu0 %455 }
  0x8b   : > { %v461_v23 = vsel %vm253_vm1, %v456_v22, 0 }
  0x8c   : > { %688 = vmatpush3.bf16.msra.mxu0 %v461_v23 }
  0x8f   : > { %690 = vmatmul.mubr.msk.bf16.vlgmr.msra.gmra.mrb[8].mxu0 %vm249_vm2, %v649_v24 }
  0x9c   : > { %v508_v45 = vpop.permute.xlu0 %507 }
  0xed   : > { %v291_v25 = vpop.f32.mrb[0].mxu0  ;;  %v337_v26 = vpop.f32.mrb[0].mxu1 }
  0xee   : > { %v667_v27 = vpop.f32.mrb[1].mxu0  ;;  %v338_v28 = vadd.f32 %v337_v26, %v291_v25  ;;  %v673_v29 = vpop.f32.mrb[1].mxu1 }
  0xef   : > { %v294_v30 = vpop.f32.mrb[2].mxu0  ;;  %v340_v31 = vpop.f32.mrb[2].mxu1 }
  0xf0   : > { %v668_v32 = vpop.f32.mrb[3].mxu0  ;;  %v674_v33 = vpop.f32.mrb[3].mxu1 }
  0xf5   : > { %v387_v34 = vpop.f32.mrb[4].mxu0  ;;  %v438_v35 = vpop.f32.mrb[4].mxu1 }
  0xf6   : > { %v393_v36 = vadd.f32 %v387_v34, %v338_v28  ;;  %v679_v37 = vpop.f32.mrb[5].mxu0  ;;  %v685_v38 = vpop.f32.mrb[5].mxu1 }
  0xf7   : > { %v390_v39 = vpop.f32.mrb[6].mxu0  ;;  %v441_v40 = vpop.f32.mrb[6].mxu1 }
  0xf8   : > { %v444_v41 = vadd.f32 %v438_v35, %v393_v36  ;;  %v680_v42 = vpop.f32.mrb[7].mxu0  ;;  %v686_v43 = vpop.f32.mrb[7].mxu1 }
 0x162   : > { %v497_v44 = vpop.f32.mrb[8].mxu0 }
 0x163   : > { %v503_v46 = vadd.f32 %v497_v44, %v444_v41  ;;  %v691_v47 = vpop.f32.mrb[9].mxu0 }
 0x164   : > { %v500_v48 = vpop.f32.mrb[10].mxu0 }
 0x165   : > { %v510_v49 = vadd.f32 %v508_v45, %v503_v46  ;;  %v692_v50 = vpop.f32.mrb[11].mxu0 }
 0x167   : > { %v511_v51 = vpack.c.bf16 %v510_v49, %v510_v49 }
 0x169   : > { %513 = vst.msk [vmem:[%s241_s20] sm:$0xf] %vm512_vm3, %v511_v51 }
 0x16a PF: > { %s13_s16 = sadd.s32 1, %s778_s16   ;;  %s898_s12 = smov %s770_s14 }
 0x16b   : > { %p10_p7 = scmp.ge.s32.totalorder %s13_s16, 18   ;;  %s899_s13 = smov %s774_s15 }
 0x16c   : > { %s900_s14 = smov %s903_s17  ;;  %s901_s15 = smov %s907_s18 }
 0x16d   :  { %12 = sbr.rel (!%p10_p7) target bundleno = 3 (0x3), region = 75 }

// kernel: disc_layer_forward.11
= control target key start
LH: loop header
LB: loop body
LE: loop exit
PB: predicated region body
PF: predicated region fallthrough
CT: control target
= control target key end

     0   :  { %s1237_s21 = smov 0   ;;  %s1443_s0 = inlined_call_operand.vmem [shape: bf16[2,64,6], index: 0, kind: input, shape index: {}]   ;;  %s1444_s1 = inlined_call_operand.vmem [shape: bf16[64,64], index: 1, kind: input, shape index: {}]   ;;  %s1445_s2 = inlined_call_operand.vmem [shape: f32[64,1], index: 2, kind: input, shape index: {}]   ;;  %s1446_s3 = inlined_call_operand.vmem [shape: bf16[128,64], index: 3, kind: input, shape index: {}]   ;;  %s1447_s4 = inlined_call_operand.vmem [shape: f32[128,1], index: 4, kind: input, shape index: {}]   ;;  %s1448_s5 = inlined_call_operand.vmem [shape: bf16[2,64,6], index: 5, kind: output, shape index: {0}]   ;;  %s1449_s6 = inlined_call_operand.vmem [shape: bf16[2,128,6], index: 6, kind: output, shape index: {1}]  }
   0x1 LB: > { %s1006_s22 = sadd.s32 4294967295, %s1199_s21   ;;  %p1010_p0 = scmp.ge.s32.totalorder %s1199_s21, 1  ;;  %s1199_s21 = sphi %s1237_s21, %s17_s21  }
   0x2   : > { %p215_p1 = scmp.lt.s32.totalorder %s1199_s21, 3 }
   0x4   : > { %p216_p2 = pnand %p1010_p0, %p215_p1 }
   0x5   : > { %p250_p3 = scmp.lt.s32.totalorder (!%p216_p2), %s1006_s22, 1  ;;  %v1181_v0 = vld [vmem:[%s1444_s1] sm:$0xff] (!%p216_p2)   ;;  %vm374_vm0 = vcmask (!%p216_p2), 523264   ;;  %v1201_v1 = vmov (!%p216_p2), 0   ;;  %v284_v3 = vld [vmem:[%s1445_s2 + $0x10] sm:$0xff] (!%p216_p2)  ;;  %v283_v4 = vld [vmem:[%s1445_s2 + $0x8] sm:$0xff] (!%p216_p2) }
   0x6   : > { %219 = sbr.rel (%p216_p2) target bundleno = 511 (0x1ff), region = 40  ;;  %1126 = vmatprep.mubr.msk.bf16.mxu0 (!%p216_p2), %vm374_vm0, %v1181_v0  ;;  %1175 = vset.pattern.permute.xlu0 (!%p216_p2), %v1201_v1  ;;  %v282_v2 = vld [vmem:[%s1445_s2] sm:$0xff] (!%p216_p2)  ;;  %v285_v5 = vld [vmem:[%s1445_s2 + $0x18] sm:$0xff] (!%p216_p2)  ;;  %v287_v10 = vld [vmem:[%s1445_s2 + $0x28] sm:$0xff] (!%p216_p2)  ;;  %vm508_vm3 = vcmask (!%p216_p2), 44032  }
   0x7   : > { %1176 = vset.pattern.permute.xlu1 (!%p216_p2), %v1201_v1  ;;  %292 = vperm.xlu0 (!%p216_p2), %1175, %v282_v2   ;;  %v286_v9 = vld [vmem:[%s1445_s2 + $0x20] sm:$0xff] (!%p216_p2)  ;;  %v288_v12 = vld [vmem:[%s1445_s2 + $0x30] sm:$0xff] (!%p216_p2)  ;;  %v289_v13 = vld [vmem:[%s1445_s2 + $0x38] sm:$0xff] (!%p216_p2) }
   0x8   : > { %302 = vperm.xlu1 (!%p216_p2), %1176, %v284_v3   ;;  %v533_v14 = vld [vmem:[%s1447_s4] sm:$0xff] (!%p216_p2)  ;;  %v534_v15 = vld [vmem:[%s1447_s4 + $0x8] sm:$0xff] (!%p216_p2)  ;;  %v1183_v17 = vld [vmem:[%s1444_s1 + $0x10] sm:$0xff] (!%p216_p2)  }
   0x9   : > { %v1182_v16 = vld [vmem:[%s1444_s1 + $0x8] sm:$0xff] (!%p216_p2)   ;;  %v535_v18 = vld [vmem:[%s1447_s4 + $0x10] sm:$0xff] (!%p216_p2)  ;;  %v536_v19 = vld [vmem:[%s1447_s4 + $0x18] sm:$0xff] (!%p216_p2) }
   0xa   : > { %v537_v20 = vld [vmem:[%s1447_s4 + $0x20] sm:$0xff] (!%p216_p2)  ;;  %v538_v21 = vld [vmem:[%s1447_s4 + $0x28] sm:$0xff] (!%p216_p2)  ;;  %v1184_v22 = vld [vmem:[%s1444_s1 + $0x18] sm:$0xff] (!%p216_p2)  }
   0xb   : > { %297 = vperm.xlu0 (!%p216_p2), %1175, %v283_v4   ;;  %v539_v23 = vld [vmem:[%s1447_s4 + $0x30] sm:$0xff] (!%p216_p2)  ;;  %v540_v24 = vld [vmem:[%s1447_s4 + $0x38] sm:$0xff] (!%p216_p2)  ;;  %v541_v25 = vld [vmem:[%s1447_s4 + $0x40] sm:$0xff] (!%p216_p2) }
   0xc   : > { %307 = vperm.xlu1 (!%p216_p2), %1176, %v285_v5   ;;  %v542_v26 = vld [vmem:[%s1447_s4 + $0x48] sm:$0xff] (!%p216_p2)  ;;  %v543_v27 = vld [vmem:[%s1447_s4 + $0x50] sm:$0xff] (!%p216_p2)  ;;  %v544_v28 = vld [vmem:[%s1447_s4 + $0x58] sm:$0xff] (!%p216_p2) }
   0xd   : > { %s1451_s22 = smov (!%p250_p3, %s1006_s22), 1  ;;  %v545_v29 = vld [vmem:[%s1447_s4 + $0x60] sm:$0xff]  ;;  %v546_v30 = vld [vmem:[%s1447_s4 + $0x68] sm:$0xff]  ;;  %v547_v31 = vld [vmem:[%s1447_s4 + $0x70] sm:$0xff] }
   0xe   : > { %s1071_s25 = sshll.u32 %s1451_s22, 5  ;;  %v548_v32 = vld [vmem:[%s1447_s4 + $0x78] sm:$0xff]  ;;  %v1185_v33 = vld [vmem:[%s1446_s3] sm:$0xff]   ;;  %v1186_v34 = vld [vmem:[%s1446_s3 + $0x10] sm:$0xff]   ;;  %s1073_s14 = sshll.u32 %s1451_s22, 6 }
   0xf   : > { %s254_s8 = scalar_lea.vmem %s1443_s0, %s1071_s25  ;;  %312 = vperm.xlu0 %1175, %v286_v9   ;;  %1146 = vmatprep.mubr.msk.bf16.mxu1 %vm374_vm0, %v1186_v34  ;;  %s1354_s26 = scalar_lea.vmem %s1448_s5, %s1071_s25 }
  0x10   : > { %v1177_v6 = vld [vmem:[%s254_s8] sm:$0xff]   ;;  %v1178_v7 = vld [vmem:[%s254_s8 + $0x8] sm:$0xff]   ;;  %v1179_v8 = vld [vmem:[%s254_s8 + $0x10] sm:$0xff]   ;;  %317 = vperm.xlu1 %1176, %v287_v10   ;;  %s1404_s17 = scalar_lea.vmem %s1449_s6, %s1073_s14 }
  0x11   : > { %1118 = vmatprep.subr.bf16.mxu0 %v1177_v6  ;;  %v1180_v11 = vld [vmem:[%s254_s8 + $0x18] sm:$0xff]  }
  0x12   : > { %1119 = vmatpush3.bf16.msra.mxu0 %v1177_v6 }
  0x13   : > { %1120 = vmatprep.subr.bf16.mxu0 %v1178_v7  ;;  %322 = vperm.xlu0 %1175, %v288_v12  }
  0x14   : > { %327 = vperm.xlu1 %1176, %v289_v13  }
  0x16   : > { %1121 = vmatpush3.bf16.msra.mxu0 %v1178_v7 }
  0x17   : > { %1122 = vmatprep.subr.bf16.mxu0 %v1179_v8  ;;  %551 = vperm.xlu0 %1175, %v533_v14  }
  0x18   : > { %556 = vperm.xlu1 %1176, %v534_v15  }
  0x1a   : > { %1123 = vmatpush3.bf16.msra.mxu0 %v1179_v8 }
  0x1b   : > { %1124 = vmatprep.subr.bf16.mxu0 %v1180_v11  ;;  %561 = vperm.xlu0 %1175, %v535_v18  }
  0x1c   : > { %566 = vperm.xlu1 %1176, %v536_v19  }
  0x1e   : > { %1125 = vmatpush3.bf16.msra.mxu0 %v1180_v11 }
  0x1f   : > { %571 = vperm.xlu0 %1175, %v537_v20  }
  0x20   : > { %576 = vperm.xlu1 %1176, %v538_v21  }
  0x21   : > { %1127 = vmatmul.mubr.msk.bf16.vlgmr.msra.gmra.mrb[0].mxu0 %vm374_vm0, %v1182_v16 }
  0x22   : > { %1130 = vmatprep.mubr.msk.bf16.mxu0 %vm374_vm0, %v1183_v17 }
  0x23   : > { %581 = vperm.xlu0 %1175, %v539_v23   ;;  %v1187_v23 = vld [vmem:[%s1446_s3 + $0x8] sm:$0xff]  }
  0x24   : > { %586 = vperm.xlu1 %1176, %v540_v24   ;;  %v1188_v24 = vld [vmem:[%s1446_s3 + $0x18] sm:$0xff]  }
  0x27   : > { %591 = vperm.xlu0 %1175, %v541_v25   ;;  %v1189_v25 = vld [vmem:[%s1446_s3 + $0x20] sm:$0xff]  }
  0x28   : > { %596 = vperm.xlu1 %1176, %v542_v26   ;;  %v1190_v26 = vld [vmem:[%s1446_s3 + $0x28] sm:$0xff]  }
  0x29   : > { %1131 = vmatmul.mubr.msk.bf16.gmra.mrb[4].mxu0 %vm374_vm0, %v1184_v22 }
  0x2a   : > { %1142 = vmatprep.mubr.msk.bf16.mxu0 %vm374_vm0, %v1185_v33 }
  0x2b   : > { %601 = vperm.xlu0 %1175, %v543_v27   ;;  %v1191_v27 = vld [vmem:[%s1446_s3 + $0x30] sm:$0xff]  }
  0x2c   : > { %606 = vperm.xlu1 %1176, %v544_v28   ;;  %v1192_v28 = vld [vmem:[%s1446_s3 + $0x38] sm:$0xff]  }
  0x2f   : > { %611 = vperm.xlu0 %1175, %v545_v29  }
  0x30   : > { %616 = vperm.xlu1 %1176, %v546_v30  }
  0x33   : > { %621 = vperm.xlu0 %1175, %v547_v31  }
  0x34   : > { %626 = vperm.xlu1 %1176, %v548_v32  }
  0x86   : > { %v293_v35 = vpop.permute.xlu0 %292 }
  0x87   : > { %v303_v36 = vpop.permute.xlu1 %302 }
  0x8a   : > { %v298_v37 = vpop.permute.xlu0 %297 }
  0x8b   : > { %v308_v38 = vpop.permute.xlu1 %307 }
  0x8e   : > { %v313_v42 = vpop.permute.xlu0 %312 }
  0x8f   : > { %v318_v48 = vpop.permute.xlu1 %317 }
  0x92   : > { %v323_v58 = vpop.permute.xlu0 %322 }
  0x93   : > { %v328_v3 = vpop.permute.xlu1 %327 }
  0x96   : > { %v552_v29 = vpop.permute.xlu0 %551 }
  0x97   : > { %v557_v30 = vpop.permute.xlu1 %556 }
  0x9a   : > { %v562_v31 = vpop.permute.xlu0 %561 }
  0x9b   : > { %v567_v32 = vpop.permute.xlu1 %566 }
  0x9e   : > { %v572_v33 = vpop.permute.xlu0 %571 }
  0x9f   : > { %v577_v34 = vpop.permute.xlu1 %576 }
  0xf4   : > { %v1128_v39 = vpop.f32.mrb[0].mxu0 }
  0xf5   : > { %v430_v40 = vadd.f32 %v1128_v39, %v303_v36  ;;  %v421_v41 = vpop.f32.mrb[1].mxu0  ;;  %v587_v36 = vpop.permute.xlu1 %586 }
  0xf6   : > { %v422_v43 = vadd.f32 %v421_v41, %v293_v35  ;;  %v1129_v44 = vpop.f32.mrb[2].mxu0  ;;  %v582_v35 = vpop.permute.xlu0 %581 }
  0xf7   : > { %vm454_vm1 = vcmp.ge.f32.partialorder %v430_v40, 0.0  ;;  %v462_v45 = vmul.f32 0.2, %v430_v40  ;;  %v433_v46 = vadd.f32 %v1129_v44, %v308_v38  ;;  %v424_v47 = vpop.f32.mrb[3].mxu0 }
  0xf8   : > { %vm452_vm2 = vcmp.ge.f32.partialorder %v422_v43, 0.0  ;;  %v460_v49 = vmul.f32 0.2, %v422_v43  ;;  %v425_v50 = vadd.f32 %v424_v47, %v298_v37 }
  0xf9   : > { %v470_v51 = vsel %vm454_vm1, %v430_v40, %v462_v45  ;;  %vm455_vm4 = vcmp.ge.f32.partialorder %v433_v46, 0.0  ;;  %v463_v52 = vmul.f32 0.2, %v433_v46  ;;  %v1398_v38 = vpop.permute.xlu1 %596 }
  0xfa   : > { %v1076_v53 = vpack.c.bf16 %v470_v51, %v470_v51  ;;  %v468_v54 = vsel %vm452_vm2, %v422_v43, %v460_v49  ;;  %vm453_vm5 = vcmp.ge.f32.partialorder %v425_v50, 0.0  ;;  %v461_v55 = vmul.f32 0.2, %v425_v50  ;;  %v1396_v37 = vpop.permute.xlu0 %591 }
  0xfb   : > { %v1074_v56 = vpack.c.bf16 %v468_v54, %v468_v54  ;;  %v471_v57 = vsel %vm455_vm4, %v433_v46, %v463_v52 }
  0xfc   : > { %511 = vst.msk [vmem:[%s1354_s26 + $0x8] sm:$0xf] %vm508_vm3, %v1076_v53  ;;  %v477_v59 = vpack.c.bf16 %v471_v57, %v470_v51  ;;  %v1077_v60 = vpack.c.bf16 %v471_v57, %v471_v57  ;;  %v469_v61 = vsel %vm453_vm5, %v425_v50, %v461_v55  ;;  %v1132_v62 = vpop.f32.mrb[4].mxu0 }
  0xfd   : > { %509 = vst.msk [vmem:[%s1354_s26] sm:$0xf] %vm508_vm3, %v1074_v56  ;;  %v476_v63 = vpack.c.bf16 %v469_v61, %v468_v54  ;;  %v1075_v0 = vpack.c.bf16 %v469_v61, %v469_v61  ;;  %v446_v1 = vadd.f32 %v1132_v62, %v323_v58  ;;  %v437_v2 = vpop.f32.mrb[5].mxu0 }
  0xfe   : > { %512 = vst.msk [vmem:[%s1354_s26 + $0xc] sm:$0xf] %vm508_vm3, %v1077_v60  ;;  %v438_v4 = vadd.f32 %v437_v2, %v313_v42  ;;  %v1133_v5 = vpop.f32.mrb[6].mxu0  ;;  %v602_v51 = vpop.permute.xlu0 %601 }
  0xff   : > { %510 = vst.msk [vmem:[%s1354_s26 + $0x4] sm:$0xf] %vm508_vm3, %v1075_v0  ;;  %vm458_vm6 = vcmp.ge.f32.partialorder %v446_v1, 0.0  ;;  %v466_v6 = vmul.f32 0.2, %v446_v1  ;;  %v449_v7 = vadd.f32 %v1133_v5, %v328_v3  ;;  %v440_v8 = vpop.f32.mrb[7].mxu0  ;;  %1134 = vmatprep.subr.bf16.mxu0 %v476_v63  ;;  %1158 = vmatprep.subr.bf16.mxu1 %v476_v63  ;;  %v607_v60 = vpop.permute.xlu1 %606 }
 0x100   : > { %vm456_vm7 = vcmp.ge.f32.partialorder %v438_v4, 0.0  ;;  %v464_v9 = vmul.f32 0.2, %v438_v4  ;;  %v441_v10 = vadd.f32 %v440_v8, %v318_v48  ;;  %1135 = vmatpush3.bf16.msra.mxu0 %v476_v63  ;;  %1162 = vmatpush3.bf16.msra.mxu1 %v476_v63 }
 0x101   : > { %v474_v11 = vsel %vm458_vm6, %v446_v1, %v466_v6  ;;  %vm459_vm8 = vcmp.ge.f32.partialorder %v449_v7, 0.0  ;;  %v467_v12 = vmul.f32 0.2, %v449_v7  ;;  %1136 = vmatprep.subr.bf16.mxu0 %v477_v59  ;;  %1159 = vmatprep.subr.bf16.mxu1 %v477_v59 }
 0x102   : > { %v1080_v13 = vpack.c.bf16 %v474_v11, %v474_v11  ;;  %v472_v14 = vsel %vm456_vm7, %v438_v4, %v464_v9  ;;  %vm457_vm9 = vcmp.ge.f32.partialorder %v441_v10, 0.0  ;;  %v465_v15 = vmul.f32 0.2, %v441_v10 }
 0x103   : > { %v1078_v16 = vpack.c.bf16 %v472_v14, %v472_v14  ;;  %v475_v17 = vsel %vm459_vm8, %v449_v7, %v467_v12 }
 0x104   : > { %515 = vst.msk [vmem:[%s1354_s26 + $0x18] sm:$0xf] %vm508_vm3, %v1080_v13  ;;  %v479_v18 = vpack.c.bf16 %v475_v17, %v474_v11  ;;  %v1081_v19 = vpack.c.bf16 %v475_v17, %v475_v17  ;;  %v473_v20 = vsel %vm457_vm9, %v441_v10, %v465_v15  ;;  %1137 = vmatpush3.bf16.msra.mxu0 %v477_v59  ;;  %v612_v11 = vpop.permute.xlu0 %611 }
 0x105   : > { %1163 = vmatpush3.bf16.msra.mxu1 %v477_v59  ;;  %513 = vst.msk [vmem:[%s1354_s26 + $0x10] sm:$0xf] %vm508_vm3, %v1078_v16  ;;  %v478_v21 = vpack.c.bf16 %v473_v20, %v472_v14  ;;  %v1079_v22 = vpack.c.bf16 %v473_v20, %v473_v20 }
 0x106   : > { %516 = vst.msk [vmem:[%s1354_s26 + $0x1c] sm:$0xf] %vm508_vm3, %v1081_v19  ;;  %v617_v19 = vpop.permute.xlu1 %616 }
 0x107   : > { %514 = vst.msk [vmem:[%s1354_s26 + $0x14] sm:$0xf] %vm508_vm3, %v1079_v22  ;;  %1138 = vmatprep.subr.bf16.mxu0 %v478_v21  ;;  %1160 = vmatprep.subr.bf16.mxu1 %v478_v21 }
 0x108   : > { %1139 = vmatpush3.bf16.msra.mxu0 %v478_v21 }
 0x109   : > { %1164 = vmatpush3.bf16.msra.mxu1 %v478_v21  ;;  %1140 = vmatprep.subr.bf16.mxu0 %v479_v18 }
 0x10a   : > { %1161 = vmatprep.subr.bf16.mxu1 %v479_v18 }
 0x10c   : > { %1141 = vmatpush3.bf16.msra.mxu0 %v479_v18 }
 0x10d   : > { %1165 = vmatpush3.bf16.msra.mxu1 %v479_v18 }
 0x10f   : > { %1143 = vmatmul.mubr.msk.bf16.vlgmr.msra.gmra.mrb[8].mxu0 %vm374_vm0, %v1187_v23 }
 0x110   : > { %1147 = vmatmul.mubr.msk.bf16.vlgmr.msra.gmra.mrb[0].mxu1 %vm374_vm0, %v1188_v24 }
 0x111   : > { %1150 = vmatprep.mubr.msk.bf16.mxu1 %vm374_vm0, %v1189_v25 }
 0x118   : > { %1151 = vmatmul.mubr.msk.bf16.gmra.mrb[4].mxu1 %vm374_vm0, %v1190_v26 }
 0x119   : > { %1154 = vmatprep.mubr.msk.bf16.mxu1 %vm374_vm0, %v1191_v27 }
 0x120   : > { %1155 = vmatmul.mubr.msk.bf16.gmra.mrb[8].mxu1 %vm374_vm0, %v1192_v28 }
 0x1e2   : > { %v1144_v39 = vpop.f32.mrb[8].mxu0 }
 0x1e3   : > { %v1148_v40 = vpop.f32.mrb[0].mxu1  ;;  %v736_v41 = vadd.f32 %v1144_v39, %v562_v31  ;;  %v727_v43 = vpop.f32.mrb[9].mxu0 }
 0x1e4   : > { %v752_v42 = vadd.f32 %v1148_v40, %v582_v35  ;;  %v743_v44 = vpop.f32.mrb[1].mxu1  ;;  %v728_v45 = vadd.f32 %v727_v43, %v552_v29  ;;  %v1145_v47 = vpop.f32.mrb[10].mxu0 }
 0x1e5   : > { %v744_v46 = vadd.f32 %v743_v44, %v572_v33  ;;  %v1149_v48 = vpop.f32.mrb[2].mxu1  ;;  %vm792_vm10 = vcmp.ge.f32.partialorder %v736_v41, 0.0  ;;  %v808_v49 = vmul.f32 0.2, %v736_v41  ;;  %v739_v56 = vadd.f32 %v1145_v47, %v567_v32  ;;  %v730_v58 = vpop.f32.mrb[11].mxu0 }
 0x1e6   : > { %vm796_vm11 = vcmp.ge.f32.partialorder %v752_v42, 0.0  ;;  %v812_v50 = vmul.f32 0.2, %v752_v42  ;;  %vm790_vm12 = vcmp.ge.f32.partialorder %v728_v45, 0.0  ;;  %v806_v52 = vmul.f32 0.2, %v728_v45  ;;  %v622_v32 = vpop.permute.xlu0 %621  ;;  %v627_v40 = vpop.permute.xlu1 %626 }
 0x1e7   : > { %vm794_vm13 = vcmp.ge.f32.partialorder %v744_v46, 0.0  ;;  %v810_v53 = vmul.f32 0.2, %v744_v46  ;;  %v824_v54 = vsel %vm792_vm10, %v736_v41, %v808_v49  ;;  %v755_v57 = vadd.f32 %v1149_v48, %v587_v36  ;;  %v746_v59 = vpop.f32.mrb[3].mxu1 }
 0x1e8   : > { %v828_v55 = vsel %vm796_vm11, %v752_v42, %v812_v50  ;;  %v1084_v61 = vpack.c.bf16 %v824_v54, %v824_v54  ;;  %v822_v63 = vsel %vm790_vm12, %v728_v45, %v806_v52  ;;  %vm793_vm14 = vcmp.ge.f32.partialorder %v739_v56, 0.0 }
 0x1e9   : > { %v1088_v62 = vpack.c.bf16 %v828_v55, %v828_v55  ;;  %v826_v0 = vsel %vm794_vm13, %v744_v46, %v810_v53  ;;  %v1082_v1 = vpack.c.bf16 %v822_v63, %v822_v63  ;;  %v809_v3 = vmul.f32 0.2, %v739_v56 }
 0x1ea   : > { %v1086_v2 = vpack.c.bf16 %v826_v0, %v826_v0  ;;  %904 = vst.msk [vmem:[%s1404_s17 + $0x8] sm:$0xf] %vm508_vm3, %v1084_v61  ;;  %vm797_vm15 = vcmp.ge.f32.partialorder %v755_v57, 0.0  ;;  %v813_v4 = vmul.f32 0.2, %v755_v57  ;;  %v731_v5 = vadd.f32 %v730_v58, %v557_v30 }
 0x1eb   : > { %908 = vst.msk [vmem:[%s1404_s17 + $0x18] sm:$0xf] %vm508_vm3, %v1088_v62  ;;  %v747_v6 = vadd.f32 %v746_v59, %v577_v34  ;;  %v1152_v7 = vpop.f32.mrb[4].mxu1  ;;  %902 = vst.msk [vmem:[%s1404_s17] sm:$0xf] %vm508_vm3, %v1082_v1  ;;  %v825_v8 = vsel %vm793_vm14, %v739_v56, %v809_v3 }
 0x1ec   : > { %906 = vst.msk [vmem:[%s1404_s17 + $0x10] sm:$0xf] %vm508_vm3, %v1086_v2  ;;  %v768_v9 = vadd.f32 %v1152_v7, %v602_v51  ;;  %v759_v10 = vpop.f32.mrb[5].mxu1  ;;  %v1085_v12 = vpack.c.bf16 %v825_v8, %v825_v8  ;;  %v829_v13 = vsel %vm797_vm15, %v755_v57, %v813_v4  ;;  %vm791_vm0 = vcmp.ge.f32.partialorder %v731_v5, 0.0 }
 0x1ed   : > { %v807_v14 = vmul.f32 0.2, %v731_v5  ;;  %v1153_v15 = vpop.f32.mrb[6].mxu1  ;;  %v1089_v16 = vpack.c.bf16 %v829_v13, %v829_v13  ;;  %vm795_vm1 = vcmp.ge.f32.partialorder %v747_v6, 0.0  ;;  %v811_v17 = vmul.f32 0.2, %v747_v6 }
 0x1ee   : > { %vm800_vm2 = vcmp.ge.f32.partialorder %v768_v9, 0.0  ;;  %v762_v18 = vpop.f32.mrb[7].mxu1  ;;  %905 = vst.msk [vmem:[%s1404_s17 + $0xc] sm:$0xf] %vm508_vm3, %v1085_v12  ;;  %v816_v21 = vmul.f32 0.2, %v768_v9  ;;  %v760_v22 = vadd.f32 %v759_v10, %v1396_v37  ;;  %v771_v23 = vadd.f32 %v1153_v15, %v607_v60 }
 0x1ef   : > { %v823_v20 = vsel %vm791_vm0, %v731_v5, %v807_v14  ;;  %909 = vst.msk [vmem:[%s1404_s17 + $0x1c] sm:$0xf] %vm508_vm3, %v1089_v16  ;;  %v827_v25 = vsel %vm795_vm1, %v747_v6, %v811_v17  ;;  %v763_v26 = vadd.f32 %v762_v18, %v1398_v38 }
 0x1f0   : > { %v1083_v24 = vpack.c.bf16 %v823_v20, %v823_v20  ;;  %v1087_v27 = vpack.c.bf16 %v827_v25, %v827_v25  ;;  %v832_v28 = vsel %vm800_vm2, %v768_v9, %v816_v21  ;;  %vm798_vm4 = vcmp.ge.f32.partialorder %v760_v22, 0.0 }
 0x1f1   : > { %v814_v29 = vmul.f32 0.2, %v760_v22  ;;  %v1092_v30 = vpack.c.bf16 %v832_v28, %v832_v28  ;;  %vm801_vm5 = vcmp.ge.f32.partialorder %v771_v23, 0.0  ;;  %v817_v31 = vmul.f32 0.2, %v771_v23 }
 0x1f2   : > { %903 = vst.msk [vmem:[%s1404_s17 + $0x4] sm:$0xf] %vm508_vm3, %v1083_v24  ;;  %vm799_vm6 = vcmp.ge.f32.partialorder %v763_v26, 0.0  ;;  %907 = vst.msk [vmem:[%s1404_s17 + $0x14] sm:$0xf] %vm508_vm3, %v1087_v27 }
 0x1f3   : > { %v830_v33 = vsel %vm798_vm4, %v760_v22, %v814_v29  ;;  %v815_v34 = vmul.f32 0.2, %v763_v26  ;;  %v1156_v35 = vpop.f32.mrb[8].mxu1  ;;  %912 = vst.msk [vmem:[%s1404_s17 + $0x28] sm:$0xf] %vm508_vm3, %v1092_v30  ;;  %v833_v37 = vsel %vm801_vm5, %v771_v23, %v817_v31 }
 0x1f4   : > { %v1090_v36 = vpack.c.bf16 %v830_v33, %v830_v33  ;;  %v784_v38 = vadd.f32 %v1156_v35, %v622_v32  ;;  %v775_v39 = vpop.f32.mrb[9].mxu1  ;;  %v1093_v41 = vpack.c.bf16 %v833_v37, %v833_v37 }
 0x1f5   : > { %v831_v42 = vsel %vm799_vm6, %v763_v26, %v815_v34  ;;  %v776_v43 = vadd.f32 %v775_v39, %v612_v11  ;;  %v1157_v44 = vpop.f32.mrb[10].mxu1 }
 0x1f6   : > { %910 = vst.msk [vmem:[%s1404_s17 + $0x20] sm:$0xf] %vm508_vm3, %v1090_v36  ;;  %v1091_v45 = vpack.c.bf16 %v831_v42, %v831_v42  ;;  %vm804_vm7 = vcmp.ge.f32.partialorder %v784_v38, 0.0  ;;  %v820_v46 = vmul.f32 0.2, %v784_v38  ;;  %v787_v47 = vadd.f32 %v1157_v44, %v627_v40  ;;  %v778_v48 = vpop.f32.mrb[11].mxu1 }
 0x1f7   : > { %913 = vst.msk [vmem:[%s1404_s17 + $0x2c] sm:$0xf] %vm508_vm3, %v1093_v41  ;;  %vm802_vm8 = vcmp.ge.f32.partialorder %v776_v43, 0.0  ;;  %v818_v49 = vmul.f32 0.2, %v776_v43  ;;  %v779_v50 = vadd.f32 %v778_v48, %v617_v19 }
 0x1f8   : > { %911 = vst.msk [vmem:[%s1404_s17 + $0x24] sm:$0xf] %vm508_vm3, %v1091_v45  ;;  %v836_v51 = vsel %vm804_vm7, %v784_v38, %v820_v46  ;;  %vm805_vm9 = vcmp.ge.f32.partialorder %v787_v47, 0.0  ;;  %v821_v52 = vmul.f32 0.2, %v787_v47 }
 0x1f9   : > { %v1096_v53 = vpack.c.bf16 %v836_v51, %v836_v51  ;;  %v834_v54 = vsel %vm802_vm8, %v776_v43, %v818_v49  ;;  %vm803_vm10 = vcmp.ge.f32.partialorder %v779_v50, 0.0  ;;  %v819_v55 = vmul.f32 0.2, %v779_v50 }
 0x1fa   : > { %v1094_v56 = vpack.c.bf16 %v834_v54, %v834_v54  ;;  %v837_v57 = vsel %vm805_vm9, %v787_v47, %v821_v52 }
 0x1fb   : > { %916 = vst.msk [vmem:[%s1404_s17 + $0x38] sm:$0xf] %vm508_vm3, %v1096_v53  ;;  %v1097_v58 = vpack.c.bf16 %v837_v57, %v837_v57  ;;  %v835_v59 = vsel %vm803_vm10, %v779_v50, %v819_v55 }
 0x1fc   : > { %914 = vst.msk [vmem:[%s1404_s17 + $0x30] sm:$0xf] %vm508_vm3, %v1094_v56  ;;  %v1095_v60 = vpack.c.bf16 %v835_v59, %v835_v59 }
 0x1fd   : > { %917 = vst.msk [vmem:[%s1404_s17 + $0x3c] sm:$0xf] %vm508_vm3, %v1097_v58 }
 0x1fe   : > { %915 = vst.msk [vmem:[%s1404_s17 + $0x34] sm:$0xf] %vm508_vm3, %v1095_v60 }
 0x1ff PF: > { %s17_s21 = sadd.s32 1, %s1199_s21  }
 0x200   : > { %p14_p4 = scmp.ge.s32.totalorder %s17_s21, 4  }
 0x202   :  { %16 = sbr.rel (!%p14_p4) target bundleno = 1 (0x1), region = 82 }

</bundles_post_ra>
